<compile_context>
chip_gen: v6e
topology: v6e:2x2x1
jax: 0.10.0
libtpu: 0.0.40
codegen_flags: <defaults>
</compile_context>

<pallas_src>
import warnings

import numpy as np

import jax
import jax.numpy as jnp
from jax import lax
from jax.experimental import pallas as pl
from jax.experimental.pallas import tpu as pltpu

LANE = 128


# ----------------------------- static helpers --------------------------------

def _rup(n, m=LANE):
    return ((n + m - 1) // m) * m


def _pad2(w, rows, cols):
    return jnp.pad(w, ((0, rows - w.shape[0]), (0, cols - w.shape[1])))


def _pad1(b, n):
    return jnp.pad(b, (0, n - b.shape[0]))


def _resize_matrix(n_in, n_out):
    """PyTorch bilinear (align_corners=False) 1-D interpolation matrix."""
    scale = n_in / n_out
    i = np.arange(n_out, dtype=np.float64)
    src = np.maximum((i + 0.5) * scale - 0.5, 0.0)
    i0 = np.floor(src).astype(np.int64)
    frac = (src - i0).astype(np.float32)
    i1 = np.minimum(i0 + 1, n_in - 1)
    m = np.zeros((n_out, n_in), np.float32)
    rows = np.arange(n_out)
    m[rows, i0] += 1.0 - frac
    m[rows, i1] += frac
    return m


def _resize_pix_matrix(in_hw, out_hw):
    """Per-image (ho*wo, hi*wi) bilinear resize matrix on flattened pixels."""
    return np.kron(_resize_matrix(in_hw[0], out_hw[0]),
                   _resize_matrix(in_hw[1], out_hw[1]))


def avg_pool_nhwc(x, f):
    B, H, W, C = x.shape
    return x.reshape(B, H // f, f, W // f, f, C).mean(axis=(2, 4))


def _branch_spec(shape):
    """BlockSpec that squeezes the leading 2-wide branch axis."""
    n = len(shape)
    return pl.BlockSpec((None,) + tuple(shape),
                        lambda b, _n=n: (b,) + (0,) * _n)


# --------------------------- Pallas kernels ----------------------------------

def _encoder_kernel(x3_ref, x4_ref, w3_ref, w4_ref,
                    prew_ref, preb_ref, w1_ref, b1_ref, w2_ref, b2_ref,
                    feat_ref, f3_ref, f4_ref):
    # Stub-backbone 1x1 convs with a K=3 (RGB) contraction: VPU scaled-adds,
    # keeping the MXU free for the downstream GEMMs.
    x3 = x3_ref[...]                                    # (B, npix3, 3) f32
    w3 = w3_ref[...]                                    # (3, c3p) f32
    f3 = jnp.maximum(x3[:, :, 0:1] * w3[0:1, :]
                     + x3[:, :, 1:2] * w3[1:2, :]
                     + x3[:, :, 2:3] * w3[2:3, :], 0.0)
    x4 = x4_ref[...]
    w4 = w4_ref[...]
    f4 = jnp.maximum(x4[:, :, 0:1] * w4[0:1, :]
                     + x4[:, :, 1:2] * w4[1:2, :]
                     + x4[:, :, 2:3] * w4[2:3, :], 0.0)
    f3_ref[...] = f3.astype(f3_ref.dtype)
    f4_ref[...] = f4.astype(f4_ref.dtype)
    # global average pool: per-image mean over pixels (no B^2 pool matmul).
    pooled = jnp.mean(f4, axis=1)                       # (B, c4p) f32
    # pre-fc + projector MLP (Linear -> ReLU -> Linear -> ReLU -> Linear)
    pre = jnp.maximum(jnp.dot(pooled.astype(jnp.bfloat16), prew_ref[...],
                              preferred_element_type=jnp.float32)
                      + preb_ref[...], 0.0)
    h = jnp.maximum(jnp.dot(pre.astype(jnp.bfloat16), w1_ref[...],
                            preferred_element_type=jnp.float32)
                    + b1_ref[...], 0.0)
    feat = jnp.dot(h.astype(jnp.bfloat16), w2_ref[...],
                   preferred_element_type=jnp.float32) + b2_ref[...]
    # fused F.normalize(dim=1) via rsqrt (EUP slot).
    inv = lax.rsqrt(jnp.maximum(jnp.sum(feat * feat, axis=1, keepdims=True),
                                1e-24))
    feat_ref[...] = feat * inv


def _featdistiller_kernel(f3_ref, f4_ref, rb_ref, cw3_ref, cw4_ref,
                          bns_ref, bnb_ref, w1_ref, b1_ref, w2_ref, b2_ref,
                          o_ref):
    # per-image bilinear resize of the layer3 map to the layer4 grid as a
    # batched matmul with f32 interpolation weights (layer4 resize == identity).
    f3r = jnp.einsum('bpq,bqc->bpc', rb_ref[...],
                     f3_ref[...].astype(jnp.float32),
                     preferred_element_type=jnp.float32)   # (B, npix4, c3p)
    # channel-concat + 1x1 conv done as split matmuls (avoids in-kernel concat).
    y = (jnp.dot(f3r.astype(jnp.bfloat16), cw3_ref[...],
                 preferred_element_type=jnp.float32)
         + jnp.dot(f4_ref[...], cw4_ref[...],
                   preferred_element_type=jnp.float32))    # (B, npix4, Fp)
    # folded eval-mode BatchNorm2d + ReLU
    y = jnp.maximum(y * bns_ref[...] + bnb_ref[...], 0.0)
    # AdaptiveAvgPool2d((1,1)) + Flatten(1): per-image mean over pixels.
    pooled = jnp.mean(y, axis=1)                           # (B, Fp) f32
    # projector: Linear -> ReLU -> Linear
    h = jnp.maximum(jnp.dot(pooled.astype(jnp.bfloat16), w1_ref[...],
                            preferred_element_type=jnp.float32)
                    + b1_ref[...], 0.0)
    out = jnp.dot(h.astype(jnp.bfloat16), w2_ref[...],
                  preferred_element_type=jnp.float32) + b2_ref[...]
    # fused F.normalize(dim=1)
    inv = lax.rsqrt(jnp.maximum(jnp.sum(out * out, axis=1, keepdims=True),
                                1e-24))
    o_ref[...] = out * inv


def _logits_kernel(qk_ref, qkh_ref, queue_ref, queueh_ref, la_ref, lah_ref):
    # [q; k] @ queue and [q_h; k_h] @ queue_hyper for the current K tile.
    la_ref[...] = jnp.dot(qk_ref[...], queue_ref[...],
                          preferred_element_type=jnp.float32)
    lah_ref[...] = jnp.dot(qkh_ref[...], queueh_ref[...],
                           preferred_element_type=jnp.float32)


# --------------------------- kernel wrappers ----------------------------------

def encoder_both_branches(pq, pk, im_q_nhwc, im_k_nhwc):
    """Runs query (slab 0) and key (slab 1) stub-encoders in ONE pallas_call."""
    B, H, W, _ = im_q_nhwc.shape
    h3, w3 = H // 4, W // 4
    h4, w4 = H // 8, W // 8
    npix3, npix4 = h3 * w3, h4 * w4

    x3 = jnp.stack([avg_pool_nhwc(im_q_nhwc, 4).reshape(B, npix3, 3),
                    avg_pool_nhwc(im_k_nhwc, 4).reshape(B, npix3, 3)])
    x4 = jnp.stack([avg_pool_nhwc(im_q_nhwc, 8).reshape(B, npix4, 3),
                    avg_pool_nhwc(im_k_nhwc, 8).reshape(B, npix4, 3)])

    sb = lambda n: jnp.stack([pq[n], pk[n]]).astype(jnp.bfloat16)   # MXU weights
    sw = lambda n: jnp.stack([pq[n], pk[n]])                        # VPU weights f32
    sf = lambda n: jnp.stack([pq[n], pk[n]]).reshape(2, 1, -1)      # biases f32

    w3s, w4s = sw('conv3_w'), sw('conv4_w')
    prews, prebs = sb('pre_w'), sf('pre_b')
    w1s, b1s = sb('fc1_w'), sf('fc1_b')
    w2s, b2s = sb('fc2_w'), sf('fc2_b')

    c3p, c4p = w3s.shape[-1], w4s.shape[-1]
    mp, hp, dim = prews.shape[-1], w1s.shape[-1], w2s.shape[-1]

    feat, f3, f4 = pl.pallas_call(
        _encoder_kernel,
        out_shape=(jax.ShapeDtypeStruct((2, B, dim), jnp.float32),
                   jax.ShapeDtypeStruct((2, B, npix3, c3p), jnp.bfloat16),
                   jax.ShapeDtypeStruct((2, B, npix4, c4p), jnp.bfloat16)),
        grid=(2,),
        in_specs=[_branch_spec((B, npix3, 3)), _branch_spec((B, npix4, 3)),
                  _branch_spec((3, c3p)), _branch_spec((3, c4p)),
                  _branch_spec((c4p, mp)), _branch_spec((1, mp)),
                  _branch_spec((mp, hp)), _branch_spec((1, hp)),
                  _branch_spec((hp, dim)), _branch_spec((1, dim))],
        out_specs=(_branch_spec((B, dim)),
                   _branch_spec((B, npix3, c3p)),
                   _branch_spec((B, npix4, c4p))),
        compiler_params=pltpu.CompilerParams(
            dimension_semantics=("parallel",)),
    )(x3, x4, w3s, w4s, prews, prebs, w1s, b1s, w2s, b2s)
    return feat, f3, f4, (B, h3, w3, h4, w4)


def featdistiller_both_branches(pq, pk, f3, f4, shapes):
    """Runs both FeatDistiller heads (query slab 0, key slab 1) in ONE call."""
    B, h3, w3, h4, w4 = shapes
    assert w4 <= 7                     # mirrors the PyTorch assert output_shape[-1] <= 7
    npix3, npix4 = h3 * w3, h4 * w4
    c3p, c4p = f3.shape[-1], f4.shape[-1]

    sb = lambda n: jnp.stack([pq[n], pk[n]]).astype(jnp.bfloat16)
    sf = lambda n: jnp.stack([pq[n], pk[n]]).reshape(2, 1, -1)

    cw3, cw4 = sb('conv_w3'), sb('conv_w4')
    bns, bnb = sf('bn_scale'), sf('bn_shift')
    w1, b1 = sb('w1'), sf('b1')
    w2, b2 = sb('w2'), sf('b2')
    Fp, hp, out = cw3.shape[-1], w1.shape[-1], w2.shape[-1]

    # per-image bilinear resize matrix, kept in f32 (exact interpolation fracs),
    # broadcast over batch for a clean batched dot_general.  Size is
    # B * npix4 * npix3 -- tiny even at real feature-map sizes.
    rb = jnp.broadcast_to(
        jnp.asarray(_resize_pix_matrix((h3, w3), (h4, w4)), jnp.float32),
        (B, npix4, npix3))

    return pl.pallas_call(
        _featdistiller_kernel,
        out_shape=jax.ShapeDtypeStruct((2, B, out), jnp.float32),
        grid=(2,),
        in_specs=[_branch_spec((B, npix3, c3p)), _branch_spec((B, npix4, c4p)),
                  pl.BlockSpec((B, npix4, npix3), lambda b: (0, 0, 0)),
                  _branch_spec((c3p, Fp)), _branch_spec((c4p, Fp)),
                  _branch_spec((1, Fp)), _branch_spec((1, Fp)),
                  _branch_spec((Fp, hp)), _branch_spec((1, hp)),
                  _branch_spec((hp, out)), _branch_spec((1, out))],
        out_specs=_branch_spec((B, out)),
        compiler_params=pltpu.CompilerParams(
            dimension_semantics=("parallel",)),
    )(f3, f4, rb, cw3, cw4, bns, bnb, w1, b1, w2, b2)


def logits_pallas(q, k, q_h, k_h, queue_bf16, queue_h_bf16):
    """Single pallas_call for both distribution-logits paths, tiled over K.

    The queues are stored in bf16 (keys are unit-norm) so no per-step cast of
    the full (dim+hyper_dim, K) queue is needed.  K tiles are independent, so
    the axis is "parallel" (splits across v7x's two TensorCores)."""
    B, dim = q.shape
    hyper_dim = q_h.shape[1]
    K = queue_bf16.shape[1]
    tk = min(K, 1024)                  # keeps per-step VMEM bounded on all gens
    assert K % tk == 0

    qk = jnp.concatenate([q, k], axis=0).astype(jnp.bfloat16)
    qkh = jnp.concatenate([q_h, k_h], axis=0).astype(jnp.bfloat16)

    la, lah = pl.pallas_call(
        _logits_kernel,
        out_shape=(jax.ShapeDtypeStruct((2 * B, K), jnp.float32),
                   jax.ShapeDtypeStruct((2 * B, K), jnp.float32)),
        grid=(K // tk,),
        in_specs=[pl.BlockSpec((2 * B, dim), lambda j: (0, 0)),
                  pl.BlockSpec((2 * B, hyper_dim), lambda j: (0, 0)),
                  pl.BlockSpec((dim, tk), lambda j: (0, j)),
                  pl.BlockSpec((hyper_dim, tk), lambda j: (0, j))],
        out_specs=(pl.BlockSpec((2 * B, tk), lambda j: (0, j)),
                   pl.BlockSpec((2 * B, tk), lambda j: (0, j))),
        compiler_params=pltpu.CompilerParams(
            dimension_semantics=("parallel",)),
    )(qk, qkh, queue_bf16, queue_h_bf16)

    return la[:B], la[B:], lah[:B], lah[B:]


# ------------------------------ CGH forward ----------------------------------

def cgh_forward(params, state, images, targets, index, shuffle_key,
                warmup=True, norm_center=False):
    m, T = params['m'], params['T']
    im_q, im_k = images[1], images[0]
    B = im_q.shape[0]
    K = state['queue'].shape[1]
    assert K % B == 0            # matches the PyTorch assert in _dequeue_and_enqueue

    # momentum update of the key encoder (done before the key forward, as in
    # PyTorch).  BN is folded at init; since q/k running stats are identical
    # buffers, the EMA of the folded scale/shift equals folding EMA'd gamma/beta.
    enc_k = jax.tree_util.tree_map(lambda pk, pq: pk * m + pq * (1.0 - m),
                                   params['enc_k'], params['enc_q'])
    hyp_k = jax.tree_util.tree_map(lambda pk, pq: pk * m + pq * (1.0 - m),
                                   params['hyp_k'], params['hyp_q'])

    # batch shuffle of key images (single-GPU variant)
    idx_shuffle = jax.random.permutation(shuffle_key, B)
    idx_unshuffle = jnp.argsort(idx_shuffle)
    im_k_sh = im_k[idx_shuffle]

    # single NCHW -> NHWC conversion per image; channels stay on lanes after this.
    im_q_nhwc = jnp.transpose(im_q, (0, 2, 3, 1))
    im_k_nhwc = jnp.transpose(im_k_sh, (0, 2, 3, 1))

    # fused encoder + FeatDistiller for both branches (2-wide parallel grid).
    feats, f3, f4, shapes = encoder_both_branches(params['enc_q'], enc_k,
                                                  im_q_nhwc, im_k_nhwc)
    hyper = featdistiller_both_branches(params['hyp_q'], hyp_k, f3, f4, shapes)

    q, k_sh = feats[0], feats[1]            # already L2-normalized in-kernel
    q_hyper, k_hyper_sh = hyper[0], hyper[1]
    k = k_sh[idx_unshuffle]
    k_hyper = k_hyper_sh[idx_unshuffle]

    # distribution logits via the K-tiled Pallas kernel (bf16 queues in state).
    logits_q, logits_k, logits_q_h, logits_k_h = logits_pallas(
        q, k, q_hyper, k_hyper, state['queue'], state['queue_hyper'])

    logits = labels = logits_hyper = labels_hyper = None
    if warmup:
        # l_pos is a tiny (B,) dot product -> plain XLA glue (f32, like PyTorch).
        lpos = jnp.sum(q * k, axis=1, keepdims=True)
        lpos_h = jnp.sum(q_hyper * k_hyper, axis=1, keepdims=True)
        logits = jnp.concatenate([lpos, logits_q], axis=1) / T
        labels = jnp.zeros((B,), jnp.int32)
        logits_hyper = jnp.concatenate([lpos_h, logits_q_h], axis=1) / T
        labels_hyper = jnp.zeros((B,), jnp.int32)

    logits_k_ori = logits_k
    logits_k_h_ori = logits_k_h
    if norm_center:
        logits_k = logits_k - state['center']
        logits_k_h = logits_k_h - state['center_hyper']

    # dequeue / enqueue (ring-buffer updates; state is donated -> in place)
    ptr = state['queue_ptr']
    new_queue = lax.dynamic_update_slice(
        state['queue'], k.T.astype(state['queue'].dtype), (jnp.int32(0), ptr))
    new_targets = lax.dynamic_update_slice(state['queue_targets'], targets, (ptr,))
    new_index = lax.dynamic_update_slice(state['queue_index'], index, (ptr,))
    new_ptr = (ptr + B) % K
    ptr_h = state['queue_hyper_ptr']
    new_queue_h = lax.dynamic_update_slice(
        state['queue_hyper'], k_hyper.T.astype(state['queue_hyper'].dtype),
        (jnp.int32(0), ptr_h))
    new_ptr_h = (ptr_h + B) % K

    # center EMA (non-DDP PyTorch path uses a batch SUM, no division)
    cm = params['center_momentum']
    new_center = (state['center'] * cm
                  + jnp.sum(logits_k_ori, axis=0, keepdims=True) * (1 - cm))
    new_center_h = (state['center_hyper'] * cm
                    + jnp.sum(logits_k_h_ori, axis=0, keepdims=True) * (1 - cm))

    new_state = dict(queue=new_queue, queue_ptr=new_ptr, queue_targets=new_targets,
                     queue_index=new_index, queue_hyper=new_queue_h,
                     queue_hyper_ptr=new_ptr_h, center=new_center,
                     center_hyper=new_center_h)
    new_params = dict(params, enc_k=enc_k, hyp_k=hyp_k)

    # multi=False -> local_logits_{q,k} are None (matching PyTorch)
    outputs = (logits_q, logits_k, logits_q_h, logits_k_h,
               logits, labels, logits_hyper, labels_hyper, None, None)
    return outputs, new_state, new_params


# ------------------------------ init ------------------------------------------
# TODO(synk): the real ResNet backbone is external; this stub encoder mimics its
# interface (layer3/layer4 hypercolumn maps + final embedding).
# Internal channel dims are zero-padded to multiples of 128 at init so all big
# intermediates / weight N-dims are lane-dense (zero pads do not change results).

def _init_encoder(key, c3, c4, dim_mlp, hid_dim, dim):
    c3p, c4p, mp, hp = _rup(c3), _rup(c4), _rup(dim_mlp), _rup(hid_dim)
    ks = jax.random.split(key, 8)
    s = 0.05
    # weights stored pre-transposed as (K_in, N_out) for MXU-direct consumption
    return dict(
        conv3_w=_pad2((jax.random.normal(ks[0], (c3, 3), jnp.float32) * s).T, 3, c3p),
        conv4_w=_pad2((jax.random.normal(ks[1], (c4, 3), jnp.float32) * s).T, 3, c4p),
        pre_w=_pad2((jax.random.normal(ks[2], (dim_mlp, c4), jnp.float32) * s).T, c4p, mp),
        pre_b=_pad1(jax.random.normal(ks[3], (dim_mlp,), jnp.float32) * s, mp),
        fc1_w=_pad2((jax.random.normal(ks[4], (hid_dim, dim_mlp), jnp.float32) * s).T, mp, hp),
        fc1_b=_pad1(jax.random.normal(ks[5], (hid_dim,), jnp.float32) * s, hp),
        fc2_w=_pad2((jax.random.normal(ks[6], (dim, hid_dim), jnp.float32) * s).T, hp, dim),
        fc2_b=jax.random.normal(ks[7], (dim,), jnp.float32) * s,
    )


def _init_featdistiller(key, c3, c4, hid_dim, out_dim, feat_dim):
    c3p, c4p, fp, hp = _rup(c3), _rup(c4), _rup(feat_dim), _rup(hid_dim)
    ks = jax.random.split(key, 9)
    s = 0.05
    in_dim = c3 + c4
    conv_w = jax.random.normal(ks[0], (feat_dim, in_dim), jnp.float32) * s
    gamma = 1.0 + 0.1 * jax.random.normal(ks[1], (feat_dim,), jnp.float32)
    beta = 0.1 * jax.random.normal(ks[2], (feat_dim,), jnp.float32)
    mean = 0.1 * jax.random.normal(ks[3], (feat_dim,), jnp.float32)
    var = 1.0 + 0.1 * jnp.abs(jax.random.normal(ks[4], (feat_dim,), jnp.float32))
    bn_scale = gamma / jnp.sqrt(var + 1e-5)       # eval-mode BN folded once
    bn_shift = beta - mean * bn_scale
    return dict(
        conv_w3=_pad2(conv_w[:, :c3].T, c3p, fp),     # pre-split + pre-transposed
        conv_w4=_pad2(conv_w[:, c3:].T, c4p, fp),
        bn_scale=_pad1(bn_scale, fp), bn_shift=_pad1(bn_shift, fp),
        w1=_pad2((jax.random.normal(ks[5], (hid_dim, feat_dim), jnp.float32) * s).T, fp, hp),
        b1=_pad1(jax.random.normal(ks[6], (hid_dim,), jnp.float32) * s, hp),
        w2=_pad2((jax.random.normal(ks[7], (out_dim, hid_dim), jnp.float32) * s).T, hp, out_dim),
        b2=jax.random.normal(ks[8], (out_dim,), jnp.float32) * s,
        # kappa (self.scale): computed via clamp/split in the torch fwd but unused
        scale=jnp.array([0.25, 1.0], jnp.float32),
    )


def init_state(key, dim, hyper_dim, K):
    k1, k2 = jax.random.split(key)
    queue = jax.random.normal(k1, (dim, K), jnp.float32)
    queue = queue / jnp.maximum(jnp.linalg.norm(queue, axis=0, keepdims=True), 1e-12)
    queue_h = jax.random.normal(k2, (hyper_dim, K), jnp.float32)
    queue_h = queue_h / jnp.maximum(jnp.linalg.norm(queue_h, axis=0, keepdims=True), 1e-12)
    # queues resident in bf16 (keys are unit-norm): halves queue HBM traffic.
    return dict(queue=queue.astype(jnp.bfloat16),
                queue_ptr=jnp.array(0, jnp.int32),
                queue_targets=-jnp.ones((K,), jnp.int32),
                queue_index=jnp.arange(K, dtype=jnp.int32),
                queue_hyper=queue_h.astype(jnp.bfloat16),
                queue_hyper_ptr=jnp.array(0, jnp.int32),
                center=jnp.zeros((1, K), jnp.float32),
                center_hyper=jnp.zeros((1, K), jnp.float32))


# ------------------------------ main ------------------------------------------

if __name__ == "__main__":
    warnings.filterwarnings("ignore", message="Some donated buffers were not usable")

    key = jax.random.PRNGKey(0)
    k_enc, k_hyp, k_state, k_img, k_shuffle = jax.random.split(key, 5)

    B, dim, hid_dim, hyper_dim, dim_mlp, c3, c4, K = 2, 16, 32, 32, 48, 24, 40, 128

    enc_q = _init_encoder(k_enc, c3, c4, dim_mlp, hid_dim, dim)
    enc_k = jax.tree_util.tree_map(jnp.array, enc_q)     # param_k.copy_(param_q)
    hyp_q = _init_featdistiller(k_hyp, c3, c4, hid_dim, hyper_dim, dim_mlp)
    hyp_k = jax.tree_util.tree_map(jnp.array, hyp_q)

    params = dict(enc_q=enc_q, enc_k=enc_k, hyp_q=hyp_q, hyp_k=hyp_k,
                  m=0.999, T=0.07, center_momentum=0.9)
    state = init_state(k_state, dim, hyper_dim, K)

    k_im1, k_im2 = jax.random.split(k_img)
    im_q = jax.random.normal(k_im1, (B, 3, 16, 16), jnp.float32)
    im_k = jax.random.normal(k_im2, (B, 3, 16, 16), jnp.float32)
    targets = jnp.array([3, 7], jnp.int32)
    index = jnp.arange(B, dtype=jnp.int32)

    # whole step jitted; queue/center state donated -> in-place ring-buffer writes.
    cgh_step = jax.jit(cgh_forward, static_argnames=("warmup", "norm_center"),
                       donate_argnums=(1,))

    outputs, new_state, new_params = cgh_step(
        params, state, [im_k, im_q], targets, index, k_shuffle,
        warmup=True, norm_center=False)

    for o in outputs:
        if o is not None:
            jax.block_until_ready(o)
    jax.block_until_ready(new_state['queue'])
    jax.block_until_ready(new_state['queue_hyper'])
    print("KERNEL_OK")
</pallas_src>

<mosaic_0001>
module attributes {stable_mosaic.version = 11 : i64} {
  func.func @_encoder_kernel(%arg0: i32, %arg1: memref<1x2x16x3xf32, #tpu.memory_space<vmem>>, %arg2: memref<1x2x4x3xf32, #tpu.memory_space<vmem>>, %arg3: memref<1x3x128xf32, #tpu.memory_space<vmem>>, %arg4: memref<1x3x128xf32, #tpu.memory_space<vmem>>, %arg5: memref<1x128x128xbf16, #tpu.memory_space<vmem>>, %arg6: memref<1x1x128xf32, #tpu.memory_space<vmem>>, %arg7: memref<1x128x128xbf16, #tpu.memory_space<vmem>>, %arg8: memref<1x1x128xf32, #tpu.memory_space<vmem>>, %arg9: memref<1x128x16xbf16, #tpu.memory_space<vmem>>, %arg10: memref<1x1x16xf32, #tpu.memory_space<vmem>>, %arg11: memref<1x2x16xf32, #tpu.memory_space<vmem>>, %arg12: memref<1x2x16x128xbf16, #tpu.memory_space<vmem>>, %arg13: memref<1x2x4x128xbf16, #tpu.memory_space<vmem>>) attributes {dimension_semantics = [#tpu.dimension_semantics<parallel>], iteration_bounds = array<i64: 2>, scalar_prefetch = 0 : i64, scratch_operands = 0 : i64, tpu.core_type = #tpu.core_type<tc>, window_params = [{transform_indices = @transform_0, window_bounds = array<i64: 1, 2, 16, 3>}, {transform_indices = @transform_1, window_bounds = array<i64: 1, 2, 4, 3>}, {transform_indices = @transform_2, window_bounds = array<i64: 1, 3, 128>}, {transform_indices = @transform_3, window_bounds = array<i64: 1, 3, 128>}, {transform_indices = @transform_4, window_bounds = array<i64: 1, 128, 128>}, {transform_indices = @transform_5, window_bounds = array<i64: 1, 1, 128>}, {transform_indices = @transform_6, window_bounds = array<i64: 1, 128, 128>}, {transform_indices = @transform_7, window_bounds = array<i64: 1, 1, 128>}, {transform_indices = @transform_8, window_bounds = array<i64: 1, 128, 16>}, {transform_indices = @transform_9, window_bounds = array<i64: 1, 1, 16>}, {transform_indices = @transform_10, window_bounds = array<i64: 1, 2, 16>}, {transform_indices = @transform_11, window_bounds = array<i64: 1, 2, 16, 128>}, {transform_indices = @transform_12, window_bounds = array<i64: 1, 2, 4, 128>}]} {
    %c0 = arith.constant 0 : index
    %c0_0 = arith.constant 0 : index
    %c0_1 = arith.constant 0 : index
    %c0_2 = arith.constant 0 : index
    %0 = vector.load %arg1[%c0, %c0_0, %c0_1, %c0_2] : memref<1x2x16x3xf32, #tpu.memory_space<vmem>>, vector<1x2x16x3xf32>
    %1 = vector.shape_cast %0 : vector<1x2x16x3xf32> to vector<2x16x3xf32>
    %c0_3 = arith.constant 0 : index
    %c0_4 = arith.constant 0 : index
    %c0_5 = arith.constant 0 : index
    %2 = vector.load %arg3[%c0_3, %c0_4, %c0_5] : memref<1x3x128xf32, #tpu.memory_space<vmem>>, vector<1x3x128xf32>
    %3 = vector.shape_cast %2 : vector<1x3x128xf32> to vector<3x128xf32>
    %4 = vector.extract_strided_slice %1 {offsets = [0, 0, 0], sizes = [2, 16, 1], strides = [1, 1, 1]} : vector<2x16x3xf32> to vector<2x16x1xf32>
    %5 = vector.extract_strided_slice %3 {offsets = [0, 0], sizes = [1, 128], strides = [1, 1]} : vector<3x128xf32> to vector<1x128xf32>
    %6 = vector.shape_cast %5 : vector<1x128xf32> to vector<1x1x128xf32>
    %7 = vector.broadcast %4 : vector<2x16x1xf32> to vector<2x16x128xf32>
    %8 = vector.broadcast %6 : vector<1x1x128xf32> to vector<2x16x128xf32>
    %9 = arith.mulf %7, %8 : vector<2x16x128xf32>
    %10 = vector.extract_strided_slice %1 {offsets = [0, 0, 1], sizes = [2, 16, 1], strides = [1, 1, 1]} : vector<2x16x3xf32> to vector<2x16x1xf32>
    %11 = vector.extract_strided_slice %3 {offsets = [1, 0], sizes = [1, 128], strides = [1, 1]} : vector<3x128xf32> to vector<1x128xf32>
    %12 = vector.shape_cast %11 : vector<1x128xf32> to vector<1x1x128xf32>
    %13 = vector.broadcast %10 : vector<2x16x1xf32> to vector<2x16x128xf32>
    %14 = vector.broadcast %12 : vector<1x1x128xf32> to vector<2x16x128xf32>
    %15 = arith.mulf %13, %14 : vector<2x16x128xf32>
    %16 = arith.addf %9, %15 : vector<2x16x128xf32>
    %17 = vector.extract_strided_slice %1 {offsets = [0, 0, 2], sizes = [2, 16, 1], strides = [1, 1, 1]} : vector<2x16x3xf32> to vector<2x16x1xf32>
    %18 = vector.extract_strided_slice %3 {offsets = [2, 0], sizes = [1, 128], strides = [1, 1]} : vector<3x128xf32> to vector<1x128xf32>
    %19 = vector.shape_cast %18 : vector<1x128xf32> to vector<1x1x128xf32>
    %20 = vector.broadcast %17 : vector<2x16x1xf32> to vector<2x16x128xf32>
    %21 = vector.broadcast %19 : vector<1x1x128xf32> to vector<2x16x128xf32>
    %22 = arith.mulf %20, %21 : vector<2x16x128xf32>
    %23 = arith.addf %16, %22 : vector<2x16x128xf32>
    %cst = arith.constant 0.000000e+00 : f32
    %24 = vector.broadcast %cst : f32 to vector<2x16x128xf32>
    %25 = arith.maximumf %23, %24 : vector<2x16x128xf32>
    %c0_6 = arith.constant 0 : index
    %c0_7 = arith.constant 0 : index
    %c0_8 = arith.constant 0 : index
    %c0_9 = arith.constant 0 : index
    %26 = vector.load %arg2[%c0_6, %c0_7, %c0_8, %c0_9] : memref<1x2x4x3xf32, #tpu.memory_space<vmem>>, vector<1x2x4x3xf32>
    %27 = vector.shape_cast %26 : vector<1x2x4x3xf32> to vector<2x4x3xf32>
    %c0_10 = arith.constant 0 : index
    %c0_11 = arith.constant 0 : index
    %c0_12 = arith.constant 0 : index
    %28 = vector.load %arg4[%c0_10, %c0_11, %c0_12] : memref<1x3x128xf32, #tpu.memory_space<vmem>>, vector<1x3x128xf32>
    %29 = vector.shape_cast %28 : vector<1x3x128xf32> to vector<3x128xf32>
    %30 = vector.extract_strided_slice %27 {offsets = [0, 0, 0], sizes = [2, 4, 1], strides = [1, 1, 1]} : vector<2x4x3xf32> to vector<2x4x1xf32>
    %31 = vector.extract_strided_slice %29 {offsets = [0, 0], sizes = [1, 128], strides = [1, 1]} : vector<3x128xf32> to vector<1x128xf32>
    %32 = vector.shape_cast %31 : vector<1x128xf32> to vector<1x1x128xf32>
    %33 = vector.broadcast %30 : vector<2x4x1xf32> to vector<2x4x128xf32>
    %34 = vector.broadcast %32 : vector<1x1x128xf32> to vector<2x4x128xf32>
    %35 = arith.mulf %33, %34 : vector<2x4x128xf32>
    %36 = vector.extract_strided_slice %27 {offsets = [0, 0, 1], sizes = [2, 4, 1], strides = [1, 1, 1]} : vector<2x4x3xf32> to vector<2x4x1xf32>
    %37 = vector.extract_strided_slice %29 {offsets = [1, 0], sizes = [1, 128], strides = [1, 1]} : vector<3x128xf32> to vector<1x128xf32>
    %38 = vector.shape_cast %37 : vector<1x128xf32> to vector<1x1x128xf32>
    %39 = vector.broadcast %36 : vector<2x4x1xf32> to vector<2x4x128xf32>
    %40 = vector.broadcast %38 : vector<1x1x128xf32> to vector<2x4x128xf32>
    %41 = arith.mulf %39, %40 : vector<2x4x128xf32>
    %42 = arith.addf %35, %41 : vector<2x4x128xf32>
    %43 = vector.extract_strided_slice %27 {offsets = [0, 0, 2], sizes = [2, 4, 1], strides = [1, 1, 1]} : vector<2x4x3xf32> to vector<2x4x1xf32>
    %44 = vector.extract_strided_slice %29 {offsets = [2, 0], sizes = [1, 128], strides = [1, 1]} : vector<3x128xf32> to vector<1x128xf32>
    %45 = vector.shape_cast %44 : vector<1x128xf32> to vector<1x1x128xf32>
    %46 = vector.broadcast %43 : vector<2x4x1xf32> to vector<2x4x128xf32>
    %47 = vector.broadcast %45 : vector<1x1x128xf32> to vector<2x4x128xf32>
    %48 = arith.mulf %46, %47 : vector<2x4x128xf32>
    %49 = arith.addf %42, %48 : vector<2x4x128xf32>
    %cst_13 = arith.constant 0.000000e+00 : f32
    %50 = vector.broadcast %cst_13 : f32 to vector<2x4x128xf32>
    %51 = arith.maximumf %49, %50 : vector<2x4x128xf32>
    %52 = arith.truncf %25 : vector<2x16x128xf32> to vector<2x16x128xbf16>
    %c0_14 = arith.constant 0 : index
    %c0_15 = arith.constant 0 : index
    %c0_16 = arith.constant 0 : index
    %c0_17 = arith.constant 0 : index
    %53 = vector.load %arg12[%c0_14, %c0_15, %c0_16, %c0_17] : memref<1x2x16x128xbf16, #tpu.memory_space<vmem>>, vector<1x2x16x128xbf16>
    %54 = vector.shape_cast %53 : vector<1x2x16x128xbf16> to vector<2x16x128xbf16>
    %55 = vector.shape_cast %52 : vector<2x16x128xbf16> to vector<1x2x16x128xbf16>
    tpu.vector_store %arg12[%c0_14, %c0_15, %c0_16, %c0_17], %55 {strides = array<i32>} : memref<1x2x16x128xbf16, #tpu.memory_space<vmem>>, vector<1x2x16x128xbf16>,
    %56 = arith.truncf %51 : vector<2x4x128xf32> to vector<2x4x128xbf16>
    %c0_18 = arith.constant 0 : index
    %c0_19 = arith.constant 0 : index
    %c0_20 = arith.constant 0 : index
    %c0_21 = arith.constant 0 : index
    %57 = vector.load %arg13[%c0_18, %c0_19, %c0_20, %c0_21] : memref<1x2x4x128xbf16, #tpu.memory_space<vmem>>, vector<1x2x4x128xbf16>
    %58 = vector.shape_cast %57 : vector<1x2x4x128xbf16> to vector<2x4x128xbf16>
    %59 = vector.shape_cast %56 : vector<2x4x128xbf16> to vector<1x2x4x128xbf16>
    tpu.vector_store %arg13[%c0_18, %c0_19, %c0_20, %c0_21], %59 {strides = array<i32>} : memref<1x2x4x128xbf16, #tpu.memory_space<vmem>>, vector<1x2x4x128xbf16>,
    %cst_22 = arith.constant dense<0.000000e+00> : vector<2x128xf32>
    %60 = vector.multi_reduction <add>, %51, %cst_22 [1] : vector<2x4x128xf32> to vector<2x128xf32>
    %cst_23 = arith.constant 4.000000e+00 : f32
    %61 = vector.broadcast %cst_23 : f32 to vector<2x128xf32>
    %62 = arith.divf %60, %61 : vector<2x128xf32>
    %63 = arith.truncf %62 : vector<2x128xf32> to vector<2x128xbf16>
    %c0_24 = arith.constant 0 : index
    %c0_25 = arith.constant 0 : index
    %c0_26 = arith.constant 0 : index
    %64 = vector.load %arg5[%c0_24, %c0_25, %c0_26] : memref<1x128x128xbf16, #tpu.memory_space<vmem>>, vector<1x128x128xbf16>
    %65 = vector.shape_cast %64 : vector<1x128x128xbf16> to vector<128x128xbf16>
    %cst_27 = arith.constant dense<0.000000e+00> : vector<2x128xf32>
    %66 = tpu.matmul %63, %65, %cst_27 {dimension_numbers = #tpu.dot_dimension_numbers<[1], [0], [0], [1], [0, 0, 1, 1], [], []>} : vector<2x128xbf16>, vector<128x128xbf16>, vector<2x128xf32> -> vector<2x128xf32>
    %c0_28 = arith.constant 0 : index
    %c0_29 = arith.constant 0 : index
    %c0_30 = arith.constant 0 : index
    %67 = vector.load %arg6[%c0_28, %c0_29, %c0_30] : memref<1x1x128xf32, #tpu.memory_space<vmem>>, vector<1x1x128xf32>
    %68 = vector.shape_cast %67 : vector<1x1x128xf32> to vector<1x128xf32>
    %69 = vector.broadcast %68 : vector<1x128xf32> to vector<2x128xf32>
    %70 = arith.addf %66, %69 : vector<2x128xf32>
    %cst_31 = arith.constant 0.000000e+00 : f32
    %71 = vector.broadcast %cst_31 : f32 to vector<2x128xf32>
    %72 = arith.maximumf %70, %71 : vector<2x128xf32>
    %73 = arith.truncf %72 : vector<2x128xf32> to vector<2x128xbf16>
    %c0_32 = arith.constant 0 : index
    %c0_33 = arith.constant 0 : index
    %c0_34 = arith.constant 0 : index
    %74 = vector.load %arg7[%c0_32, %c0_33, %c0_34] : memref<1x128x128xbf16, #tpu.memory_space<vmem>>, vector<1x128x128xbf16>
    %75 = vector.shape_cast %74 : vector<1x128x128xbf16> to vector<128x128xbf16>
    %cst_35 = arith.constant dense<0.000000e+00> : vector<2x128xf32>
    %76 = tpu.matmul %73, %75, %cst_35 {dimension_numbers = #tpu.dot_dimension_numbers<[1], [0], [0], [1], [0, 0, 1, 1], [], []>} : vector<2x128xbf16>, vector<128x128xbf16>, vector<2x128xf32> -> vector<2x128xf32>
    %c0_36 = arith.constant 0 : index
    %c0_37 = arith.constant 0 : index
    %c0_38 = arith.constant 0 : index
    %77 = vector.load %arg8[%c0_36, %c0_37, %c0_38] : memref<1x1x128xf32, #tpu.memory_space<vmem>>, vector<1x1x128xf32>
    %78 = vector.shape_cast %77 : vector<1x1x128xf32> to vector<1x128xf32>
    %79 = vector.broadcast %78 : vector<1x128xf32> to vector<2x128xf32>
    %80 = arith.addf %76, %79 : vector<2x128xf32>
    %cst_39 = arith.constant 0.000000e+00 : f32
    %81 = vector.broadcast %cst_39 : f32 to vector<2x128xf32>
    %82 = arith.maximumf %80, %81 : vector<2x128xf32>
    %83 = arith.truncf %82 : vector<2x128xf32> to vector<2x128xbf16>
    %c0_40 = arith.constant 0 : index
    %c0_41 = arith.constant 0 : index
    %c0_42 = arith.constant 0 : index
    %84 = vector.load %arg9[%c0_40, %c0_41, %c0_42] : memref<1x128x16xbf16, #tpu.memory_space<vmem>>, vector<1x128x16xbf16>
    %85 = vector.shape_cast %84 : vector<1x128x16xbf16> to vector<128x16xbf16>
    %cst_43 = arith.constant dense<0.000000e+00> : vector<2x16xf32>
    %86 = tpu.matmul %83, %85, %cst_43 {dimension_numbers = #tpu.dot_dimension_numbers<[1], [0], [0], [1], [0, 0, 1, 1], [], []>} : vector<2x128xbf16>, vector<128x16xbf16>, vector<2x16xf32> -> vector<2x16xf32>
    %c0_44 = arith.constant 0 : index
    %c0_45 = arith.constant 0 : index
    %c0_46 = arith.constant 0 : index
    %87 = vector.load %arg10[%c0_44, %c0_45, %c0_46] : memref<1x1x16xf32, #tpu.memory_space<vmem>>, vector<1x1x16xf32>
    %88 = vector.shape_cast %87 : vector<1x1x16xf32> to vector<1x16xf32>
    %89 = vector.broadcast %88 : vector<1x16xf32> to vector<2x16xf32>
    %90 = arith.addf %86, %89 : vector<2x16xf32>
    %91 = arith.mulf %90, %90 : vector<2x16xf32>
    %cst_47 = arith.constant dense<0.000000e+00> : vector<2xf32>
    %92 = vector.multi_reduction <add>, %91, %cst_47 [1] : vector<2x16xf32> to vector<2xf32>
    %93 = vector.shape_cast %92 : vector<2xf32> to vector<2x1xf32>
    %cst_48 = arith.constant 1.000000e-24 : f32
    %94 = vector.broadcast %cst_48 : f32 to vector<2x1xf32>
    %95 = arith.maximumf %93, %94 : vector<2x1xf32>
    %96 = math.rsqrt %95 : vector<2x1xf32>
    %97 = vector.broadcast %96 : vector<2x1xf32> to vector<2x16xf32>
    %98 = arith.mulf %90, %97 : vector<2x16xf32>
    %c0_49 = arith.constant 0 : index
    %c0_50 = arith.constant 0 : index
    %c0_51 = arith.constant 0 : index
    %99 = vector.load %arg11[%c0_49, %c0_50, %c0_51] : memref<1x2x16xf32, #tpu.memory_space<vmem>>, vector<1x2x16xf32>
    %100 = vector.shape_cast %99 : vector<1x2x16xf32> to vector<2x16xf32>
    %101 = vector.shape_cast %98 : vector<2x16xf32> to vector<1x2x16xf32>
    tpu.vector_store %arg11[%c0_49, %c0_50, %c0_51], %101 {strides = array<i32>} : memref<1x2x16xf32, #tpu.memory_space<vmem>>, vector<1x2x16xf32>,
    return
  }
  func.func @transform_0(%arg0: i32) -> (i32, i32, i32, i32) {
    %c0_i32 = arith.constant 0 : i32
    %c0_i32_0 = arith.constant 0 : i32
    %c0_i32_1 = arith.constant 0 : i32
    %c0_i32_2 = arith.constant 0 : i32
    return %arg0, %c0_i32, %c0_i32_0, %c0_i32_1 : i32, i32, i32, i32
  }
  func.func @transform_1(%arg0: i32) -> (i32, i32, i32, i32) {
    %c0_i32 = arith.constant 0 : i32
    %c0_i32_0 = arith.constant 0 : i32
    %c0_i32_1 = arith.constant 0 : i32
    %c0_i32_2 = arith.constant 0 : i32
    return %arg0, %c0_i32, %c0_i32_0, %c0_i32_1 : i32, i32, i32, i32
  }
  func.func @transform_2(%arg0: i32) -> (i32, i32, i32) {
    %c0_i32 = arith.constant 0 : i32
    %c0_i32_0 = arith.constant 0 : i32
    %c0_i32_1 = arith.constant 0 : i32
    return %arg0, %c0_i32, %c0_i32_0 : i32, i32, i32
  }
  func.func @transform_3(%arg0: i32) -> (i32, i32, i32) {
    %c0_i32 = arith.constant 0 : i32
    %c0_i32_0 = arith.constant 0 : i32
    %c0_i32_1 = arith.constant 0 : i32
    return %arg0, %c0_i32, %c0_i32_0 : i32, i32, i32
  }
  func.func @transform_4(%arg0: i32) -> (i32, i32, i32) {
    %c0_i32 = arith.constant 0 : i32
    %c0_i32_0 = arith.constant 0 : i32
    %c0_i32_1 = arith.constant 0 : i32
    return %arg0, %c0_i32, %c0_i32_0 : i32, i32, i32
  }
  func.func @transform_5(%arg0: i32) -> (i32, i32, i32) {
    %c0_i32 = arith.constant 0 : i32
    %c0_i32_0 = arith.constant 0 : i32
    %c0_i32_1 = arith.constant 0 : i32
    return %arg0, %c0_i32, %c0_i32_0 : i32, i32, i32
  }
  func.func @transform_6(%arg0: i32) -> (i32, i32, i32) {
    %c0_i32 = arith.constant 0 : i32
    %c0_i32_0 = arith.constant 0 : i32
    %c0_i32_1 = arith.constant 0 : i32
    return %arg0, %c0_i32, %c0_i32_0 : i32, i32, i32
  }
  func.func @transform_7(%arg0: i32) -> (i32, i32, i32) {
    %c0_i32 = arith.constant 0 : i32
    %c0_i32_0 = arith.constant 0 : i32
    %c0_i32_1 = arith.constant 0 : i32
    return %arg0, %c0_i32, %c0_i32_0 : i32, i32, i32
  }
  func.func @transform_8(%arg0: i32) -> (i32, i32, i32) {
    %c0_i32 = arith.constant 0 : i32
    %c0_i32_0 = arith.constant 0 : i32
    %c0_i32_1 = arith.constant 0 : i32
    return %arg0, %c0_i32, %c0_i32_0 : i32, i32, i32
  }
  func.func @transform_9(%arg0: i32) -> (i32, i32, i32) {
    %c0_i32 = arith.constant 0 : i32
    %c0_i32_0 = arith.constant 0 : i32
    %c0_i32_1 = arith.constant 0 : i32
    return %arg0, %c0_i32, %c0_i32_0 : i32, i32, i32
  }
  func.func @transform_10(%arg0: i32) -> (i32, i32, i32) {
    %c0_i32 = arith.constant 0 : i32
    %c0_i32_0 = arith.constant 0 : i32
    %c0_i32_1 = arith.constant 0 : i32
    return %arg0, %c0_i32, %c0_i32_0 : i32, i32, i32
  }
  func.func @transform_11(%arg0: i32) -> (i32, i32, i32, i32) {
    %c0_i32 = arith.constant 0 : i32
    %c0_i32_0 = arith.constant 0 : i32
    %c0_i32_1 = arith.constant 0 : i32
    %c0_i32_2 = arith.constant 0 : i32
    return %arg0, %c0_i32, %c0_i32_0, %c0_i32_1 : i32, i32, i32, i32
  }
  func.func @transform_12(%arg0: i32) -> (i32, i32, i32, i32) {
    %c0_i32 = arith.constant 0 : i32
    %c0_i32_0 = arith.constant 0 : i32
    %c0_i32_1 = arith.constant 0 : i32
    %c0_i32_2 = arith.constant 0 : i32
    return %arg0, %c0_i32, %c0_i32_0, %c0_i32_1 : i32, i32, i32, i32
  }
}

module attributes {stable_mosaic.version = 11 : i64} {
  func.func @_featdistiller_kernel(%arg0: i32, %arg1: memref<1x2x16x128xbf16, #tpu.memory_space<vmem>>, %arg2: memref<1x2x4x128xbf16, #tpu.memory_space<vmem>>, %arg3: memref<2x4x16xf32, #tpu.memory_space<vmem>>, %arg4: memref<1x128x128xbf16, #tpu.memory_space<vmem>>, %arg5: memref<1x128x128xbf16, #tpu.memory_space<vmem>>, %arg6: memref<1x1x128xf32, #tpu.memory_space<vmem>>, %arg7: memref<1x1x128xf32, #tpu.memory_space<vmem>>, %arg8: memref<1x128x128xbf16, #tpu.memory_space<vmem>>, %arg9: memref<1x1x128xf32, #tpu.memory_space<vmem>>, %arg10: memref<1x128x32xbf16, #tpu.memory_space<vmem>>, %arg11: memref<1x1x32xf32, #tpu.memory_space<vmem>>, %arg12: memref<1x2x32xf32, #tpu.memory_space<vmem>>) attributes {dimension_semantics = [#tpu.dimension_semantics<parallel>], iteration_bounds = array<i64: 2>, scalar_prefetch = 0 : i64, scratch_operands = 0 : i64, tpu.core_type = #tpu.core_type<tc>, window_params = [{transform_indices = @transform_0, window_bounds = array<i64: 1, 2, 16, 128>}, {transform_indices = @transform_1, window_bounds = array<i64: 1, 2, 4, 128>}, {pipeline_mode = #tpu.pipeline_mode<synchronous>, transform_indices = @transform_2, window_bounds = array<i64: 2, 4, 16>}, {transform_indices = @transform_3, window_bounds = array<i64: 1, 128, 128>}, {transform_indices = @transform_4, window_bounds = array<i64: 1, 128, 128>}, {transform_indices = @transform_5, window_bounds = array<i64: 1, 1, 128>}, {transform_indices = @transform_6, window_bounds = array<i64: 1, 1, 128>}, {transform_indices = @transform_7, window_bounds = array<i64: 1, 128, 128>}, {transform_indices = @transform_8, window_bounds = array<i64: 1, 1, 128>}, {transform_indices = @transform_9, window_bounds = array<i64: 1, 128, 32>}, {transform_indices = @transform_10, window_bounds = array<i64: 1, 1, 32>}, {transform_indices = @transform_11, window_bounds = array<i64: 1, 2, 32>}]} {
    %c0 = arith.constant 0 : index
    %c0_0 = arith.constant 0 : index
    %c0_1 = arith.constant 0 : index
    %0 = vector.load %arg3[%c0, %c0_0, %c0_1] : memref<2x4x16xf32, #tpu.memory_space<vmem>>, vector<2x4x16xf32>
    %c0_2 = arith.constant 0 : index
    %c0_3 = arith.constant 0 : index
    %c0_4 = arith.constant 0 : index
    %c0_5 = arith.constant 0 : index
    %1 = vector.load %arg1[%c0_2, %c0_3, %c0_4, %c0_5] : memref<1x2x16x128xbf16, #tpu.memory_space<vmem>>, vector<1x2x16x128xbf16>
    %2 = vector.shape_cast %1 : vector<1x2x16x128xbf16> to vector<2x16x128xbf16>
    %3 = arith.extf %2 : vector<2x16x128xbf16> to vector<2x16x128xf32>
    "tpu.trace_start"() <{level = 10 : i32, message = "bpq,bqc->bpc"}> : () -> ()
    %cst = arith.constant dense<0.000000e+00> : vector<2x4x128xf32>
    %4 = tpu.matmul %0, %3, %cst {dimension_numbers = #tpu.dot_dimension_numbers<[2], [1], [1], [2], [0, 0, 0, 1, 1, 2], [0], [0]>} : vector<2x4x16xf32>, vector<2x16x128xf32>, vector<2x4x128xf32> -> vector<2x4x128xf32>
    "tpu.trace_stop"() : () -> ()
    %5 = arith.truncf %4 : vector<2x4x128xf32> to vector<2x4x128xbf16>
    %c0_6 = arith.constant 0 : index
    %c0_7 = arith.constant 0 : index
    %c0_8 = arith.constant 0 : index
    %6 = vector.load %arg4[%c0_6, %c0_7, %c0_8] : memref<1x128x128xbf16, #tpu.memory_space<vmem>>, vector<1x128x128xbf16>
    %7 = vector.shape_cast %6 : vector<1x128x128xbf16> to vector<128x128xbf16>
    %cst_9 = arith.constant dense<0.000000e+00> : vector<2x4x128xf32>
    %8 = tpu.matmul %5, %7, %cst_9 {dimension_numbers = #tpu.dot_dimension_numbers<[2], [0], [0, 1], [1], [0, 0, 0, 1, 1, 1], [], []>} : vector<2x4x128xbf16>, vector<128x128xbf16>, vector<2x4x128xf32> -> vector<2x4x128xf32>
    %c0_10 = arith.constant 0 : index
    %c0_11 = arith.constant 0 : index
    %c0_12 = arith.constant 0 : index
    %c0_13 = arith.constant 0 : index
    %9 = vector.load %arg2[%c0_10, %c0_11, %c0_12, %c0_13] : memref<1x2x4x128xbf16, #tpu.memory_space<vmem>>, vector<1x2x4x128xbf16>
    %10 = vector.shape_cast %9 : vector<1x2x4x128xbf16> to vector<2x4x128xbf16>
    %c0_14 = arith.constant 0 : index
    %c0_15 = arith.constant 0 : index
    %c0_16 = arith.constant 0 : index
    %11 = vector.load %arg5[%c0_14, %c0_15, %c0_16] : memref<1x128x128xbf16, #tpu.memory_space<vmem>>, vector<1x128x128xbf16>
    %12 = vector.shape_cast %11 : vector<1x128x128xbf16> to vector<128x128xbf16>
    %cst_17 = arith.constant dense<0.000000e+00> : vector<2x4x128xf32>
    %13 = tpu.matmul %10, %12, %cst_17 {dimension_numbers = #tpu.dot_dimension_numbers<[2], [0], [0, 1], [1], [0, 0, 0, 1, 1, 1], [], []>} : vector<2x4x128xbf16>, vector<128x128xbf16>, vector<2x4x128xf32> -> vector<2x4x128xf32>
    %14 = arith.addf %8, %13 : vector<2x4x128xf32>
    %c0_18 = arith.constant 0 : index
    %c0_19 = arith.constant 0 : index
    %c0_20 = arith.constant 0 : index
    %15 = vector.load %arg6[%c0_18, %c0_19, %c0_20] : memref<1x1x128xf32, #tpu.memory_space<vmem>>, vector<1x1x128xf32>
    %16 = vector.shape_cast %15 : vector<1x1x128xf32> to vector<1x128xf32>
    %17 = vector.shape_cast %16 : vector<1x128xf32> to vector<1x1x128xf32>
    %18 = vector.broadcast %17 : vector<1x1x128xf32> to vector<2x4x128xf32>
    %19 = arith.mulf %14, %18 : vector<2x4x128xf32>
    %c0_21 = arith.constant 0 : index
    %c0_22 = arith.constant 0 : index
    %c0_23 = arith.constant 0 : index
    %20 = vector.load %arg7[%c0_21, %c0_22, %c0_23] : memref<1x1x128xf32, #tpu.memory_space<vmem>>, vector<1x1x128xf32>
    %21 = vector.shape_cast %20 : vector<1x1x128xf32> to vector<1x128xf32>
    %22 = vector.shape_cast %21 : vector<1x128xf32> to vector<1x1x128xf32>
    %23 = vector.broadcast %22 : vector<1x1x128xf32> to vector<2x4x128xf32>
    %24 = arith.addf %19, %23 : vector<2x4x128xf32>
    %cst_24 = arith.constant 0.000000e+00 : f32
    %25 = vector.broadcast %cst_24 : f32 to vector<2x4x128xf32>
    %26 = arith.maximumf %24, %25 : vector<2x4x128xf32>
    %cst_25 = arith.constant dense<0.000000e+00> : vector<2x128xf32>
    %27 = vector.multi_reduction <add>, %26, %cst_25 [1] : vector<2x4x128xf32> to vector<2x128xf32>
    %cst_26 = arith.constant 4.000000e+00 : f32
    %28 = vector.broadcast %cst_26 : f32 to vector<2x128xf32>
    %29 = arith.divf %27, %28 : vector<2x128xf32>
    %30 = arith.truncf %29 : vector<2x128xf32> to vector<2x128xbf16>
    %c0_27 = arith.constant 0 : index
    %c0_28 = arith.constant 0 : index
    %c0_29 = arith.constant 0 : index
    %31 = vector.load %arg8[%c0_27, %c0_28, %c0_29] : memref<1x128x128xbf16, #tpu.memory_space<vmem>>, vector<1x128x128xbf16>
    %32 = vector.shape_cast %31 : vector<1x128x128xbf16> to vector<128x128xbf16>
    %cst_30 = arith.constant dense<0.000000e+00> : vector<2x128xf32>
    %33 = tpu.matmul %30, %32, %cst_30 {dimension_numbers = #tpu.dot_dimension_numbers<[1], [0], [0], [1], [0, 0, 1, 1], [], []>} : vector<2x128xbf16>, vector<128x128xbf16>, vector<2x128xf32> -> vector<2x128xf32>
    %c0_31 = arith.constant 0 : index
    %c0_32 = arith.constant 0 : index
    %c0_33 = arith.constant 0 : index
    %34 = vector.load %arg9[%c0_31, %c0_32, %c0_33] : memref<1x1x128xf32, #tpu.memory_space<vmem>>, vector<1x1x128xf32>
    %35 = vector.shape_cast %34 : vector<1x1x128xf32> to vector<1x128xf32>
    %36 = vector.broadcast %35 : vector<1x128xf32> to vector<2x128xf32>
    %37 = arith.addf %33, %36 : vector<2x128xf32>
    %cst_34 = arith.constant 0.000000e+00 : f32
    %38 = vector.broadcast %cst_34 : f32 to vector<2x128xf32>
    %39 = arith.maximumf %37, %38 : vector<2x128xf32>
    %40 = arith.truncf %39 : vector<2x128xf32> to vector<2x128xbf16>
    %c0_35 = arith.constant 0 : index
    %c0_36 = arith.constant 0 : index
    %c0_37 = arith.constant 0 : index
    %41 = vector.load %arg10[%c0_35, %c0_36, %c0_37] : memref<1x128x32xbf16, #tpu.memory_space<vmem>>, vector<1x128x32xbf16>
    %42 = vector.shape_cast %41 : vector<1x128x32xbf16> to vector<128x32xbf16>
    %cst_38 = arith.constant dense<0.000000e+00> : vector<2x32xf32>
    %43 = tpu.matmul %40, %42, %cst_38 {dimension_numbers = #tpu.dot_dimension_numbers<[1], [0], [0], [1], [0, 0, 1, 1], [], []>} : vector<2x128xbf16>, vector<128x32xbf16>, vector<2x32xf32> -> vector<2x32xf32>
    %c0_39 = arith.constant 0 : index
    %c0_40 = arith.constant 0 : index
    %c0_41 = arith.constant 0 : index
    %44 = vector.load %arg11[%c0_39, %c0_40, %c0_41] : memref<1x1x32xf32, #tpu.memory_space<vmem>>, vector<1x1x32xf32>
    %45 = vector.shape_cast %44 : vector<1x1x32xf32> to vector<1x32xf32>
    %46 = vector.broadcast %45 : vector<1x32xf32> to vector<2x32xf32>
    %47 = arith.addf %43, %46 : vector<2x32xf32>
    %48 = arith.mulf %47, %47 : vector<2x32xf32>
    %cst_42 = arith.constant dense<0.000000e+00> : vector<2xf32>
    %49 = vector.multi_reduction <add>, %48, %cst_42 [1] : vector<2x32xf32> to vector<2xf32>
    %50 = vector.shape_cast %49 : vector<2xf32> to vector<2x1xf32>
    %cst_43 = arith.constant 1.000000e-24 : f32
    %51 = vector.broadcast %cst_43 : f32 to vector<2x1xf32>
    %52 = arith.maximumf %50, %51 : vector<2x1xf32>
    %53 = math.rsqrt %52 : vector<2x1xf32>
    %54 = vector.broadcast %53 : vector<2x1xf32> to vector<2x32xf32>
    %55 = arith.mulf %47, %54 : vector<2x32xf32>
    %c0_44 = arith.constant 0 : index
    %c0_45 = arith.constant 0 : index
    %c0_46 = arith.constant 0 : index
    %56 = vector.load %arg12[%c0_44, %c0_45, %c0_46] : memref<1x2x32xf32, #tpu.memory_space<vmem>>, vector<1x2x32xf32>
    %57 = vector.shape_cast %56 : vector<1x2x32xf32> to vector<2x32xf32>
    %58 = vector.shape_cast %55 : vector<2x32xf32> to vector<1x2x32xf32>
    tpu.vector_store %arg12[%c0_44, %c0_45, %c0_46], %58 {strides = array<i32>} : memref<1x2x32xf32, #tpu.memory_space<vmem>>, vector<1x2x32xf32>,
    return
  }
  func.func @transform_0(%arg0: i32) -> (i32, i32, i32, i32) {
    %c0_i32 = arith.constant 0 : i32
    %c0_i32_0 = arith.constant 0 : i32
    %c0_i32_1 = arith.constant 0 : i32
    %c0_i32_2 = arith.constant 0 : i32
    return %arg0, %c0_i32, %c0_i32_0, %c0_i32_1 : i32, i32, i32, i32
  }
  func.func @transform_1(%arg0: i32) -> (i32, i32, i32, i32) {
    %c0_i32 = arith.constant 0 : i32
    %c0_i32_0 = arith.constant 0 : i32
    %c0_i32_1 = arith.constant 0 : i32
    %c0_i32_2 = arith.constant 0 : i32
    return %arg0, %c0_i32, %c0_i32_0, %c0_i32_1 : i32, i32, i32, i32
  }
  func.func @transform_2(%arg0: i32) -> (i32, i32, i32) {
    %c0_i32 = arith.constant 0 : i32
    %c0_i32_0 = arith.constant 0 : i32
    %c0_i32_1 = arith.constant 0 : i32
    %c0_i32_2 = arith.constant 0 : i32
    return %c0_i32, %c0_i32_0, %c0_i32_1 : i32, i32, i32
  }
  func.func @transform_3(%arg0: i32) -> (i32, i32, i32) {
    %c0_i32 = arith.constant 0 : i32
    %c0_i32_0 = arith.constant 0 : i32
    %c0_i32_1 = arith.constant 0 : i32
    return %arg0, %c0_i32, %c0_i32_0 : i32, i32, i32
  }
  func.func @transform_4(%arg0: i32) -> (i32, i32, i32) {
    %c0_i32 = arith.constant 0 : i32
    %c0_i32_0 = arith.constant 0 : i32
    %c0_i32_1 = arith.constant 0 : i32
    return %arg0, %c0_i32, %c0_i32_0 : i32, i32, i32
  }
  func.func @transform_5(%arg0: i32) -> (i32, i32, i32) {
    %c0_i32 = arith.constant 0 : i32
    %c0_i32_0 = arith.constant 0 : i32
    %c0_i32_1 = arith.constant 0 : i32
    return %arg0, %c0_i32, %c0_i32_0 : i32, i32, i32
  }
  func.func @transform_6(%arg0: i32) -> (i32, i32, i32) {
    %c0_i32 = arith.constant 0 : i32
    %c0_i32_0 = arith.constant 0 : i32
    %c0_i32_1 = arith.constant 0 : i32
    return %arg0, %c0_i32, %c0_i32_0 : i32, i32, i32
  }
  func.func @transform_7(%arg0: i32) -> (i32, i32, i32) {
    %c0_i32 = arith.constant 0 : i32
    %c0_i32_0 = arith.constant 0 : i32
    %c0_i32_1 = arith.constant 0 : i32
    return %arg0, %c0_i32, %c0_i32_0 : i32, i32, i32
  }
  func.func @transform_8(%arg0: i32) -> (i32, i32, i32) {
    %c0_i32 = arith.constant 0 : i32
    %c0_i32_0 = arith.constant 0 : i32
    %c0_i32_1 = arith.constant 0 : i32
    return %arg0, %c0_i32, %c0_i32_0 : i32, i32, i32
  }
  func.func @transform_9(%arg0: i32) -> (i32, i32, i32) {
    %c0_i32 = arith.constant 0 : i32
    %c0_i32_0 = arith.constant 0 : i32
    %c0_i32_1 = arith.constant 0 : i32
    return %arg0, %c0_i32, %c0_i32_0 : i32, i32, i32
  }
  func.func @transform_10(%arg0: i32) -> (i32, i32, i32) {
    %c0_i32 = arith.constant 0 : i32
    %c0_i32_0 = arith.constant 0 : i32
    %c0_i32_1 = arith.constant 0 : i32
    return %arg0, %c0_i32, %c0_i32_0 : i32, i32, i32
  }
  func.func @transform_11(%arg0: i32) -> (i32, i32, i32) {
    %c0_i32 = arith.constant 0 : i32
    %c0_i32_0 = arith.constant 0 : i32
    %c0_i32_1 = arith.constant 0 : i32
    return %arg0, %c0_i32, %c0_i32_0 : i32, i32, i32
  }
}

module attributes {stable_mosaic.version = 11 : i64} {
  func.func @_logits_kernel(%arg0: i32, %arg1: memref<4x16xbf16, #tpu.memory_space<vmem>>, %arg2: memref<4x32xbf16, #tpu.memory_space<vmem>>, %arg3: memref<16x128xbf16, #tpu.memory_space<vmem>>, %arg4: memref<32x128xbf16, #tpu.memory_space<vmem>>, %arg5: memref<4x128xf32, #tpu.memory_space<vmem>>, %arg6: memref<4x128xf32, #tpu.memory_space<vmem>>) attributes {dimension_semantics = [#tpu.dimension_semantics<parallel>], iteration_bounds = array<i64: 1>, scalar_prefetch = 0 : i64, scratch_operands = 0 : i64, tpu.core_type = #tpu.core_type<tc>, window_params = [{pipeline_mode = #tpu.pipeline_mode<synchronous>, transform_indices = @transform_0, window_bounds = array<i64: 4, 16>}, {pipeline_mode = #tpu.pipeline_mode<synchronous>, transform_indices = @transform_1, window_bounds = array<i64: 4, 32>}, {transform_indices = @transform_2, window_bounds = array<i64: 16, 128>}, {transform_indices = @transform_3, window_bounds = array<i64: 32, 128>}, {transform_indices = @transform_4, window_bounds = array<i64: 4, 128>}, {transform_indices = @transform_5, window_bounds = array<i64: 4, 128>}]} {
    %c0 = arith.constant 0 : index
    %c0_0 = arith.constant 0 : index
    %0 = vector.load %arg1[%c0, %c0_0] : memref<4x16xbf16, #tpu.memory_space<vmem>>, vector<4x16xbf16>
    %c0_1 = arith.constant 0 : index
    %c0_2 = arith.constant 0 : index
    %1 = vector.load %arg3[%c0_1, %c0_2] : memref<16x128xbf16, #tpu.memory_space<vmem>>, vector<16x128xbf16>
    %cst = arith.constant dense<0.000000e+00> : vector<4x128xf32>
    %2 = tpu.matmul %0, %1, %cst {dimension_numbers = #tpu.dot_dimension_numbers<[1], [0], [0], [1], [0, 0, 1, 1], [], []>} : vector<4x16xbf16>, vector<16x128xbf16>, vector<4x128xf32> -> vector<4x128xf32>
    %c0_3 = arith.constant 0 : index
    %c0_4 = arith.constant 0 : index
    %3 = vector.load %arg5[%c0_3, %c0_4] : memref<4x128xf32, #tpu.memory_space<vmem>>, vector<4x128xf32>
    tpu.vector_store %arg5[%c0_3, %c0_4], %2 {strides = array<i32>} : memref<4x128xf32, #tpu.memory_space<vmem>>, vector<4x128xf32>,
    %c0_5 = arith.constant 0 : index
    %c0_6 = arith.constant 0 : index
    %4 = vector.load %arg2[%c0_5, %c0_6] : memref<4x32xbf16, #tpu.memory_space<vmem>>, vector<4x32xbf16>
    %c0_7 = arith.constant 0 : index
    %c0_8 = arith.constant 0 : index
    %5 = vector.load %arg4[%c0_7, %c0_8] : memref<32x128xbf16, #tpu.memory_space<vmem>>, vector<32x128xbf16>
    %cst_9 = arith.constant dense<0.000000e+00> : vector<4x128xf32>
    %6 = tpu.matmul %4, %5, %cst_9 {dimension_numbers = #tpu.dot_dimension_numbers<[1], [0], [0], [1], [0, 0, 1, 1], [], []>} : vector<4x32xbf16>, vector<32x128xbf16>, vector<4x128xf32> -> vector<4x128xf32>
    %c0_10 = arith.constant 0 : index
    %c0_11 = arith.constant 0 : index
    %7 = vector.load %arg6[%c0_10, %c0_11] : memref<4x128xf32, #tpu.memory_space<vmem>>, vector<4x128xf32>
    tpu.vector_store %arg6[%c0_10, %c0_11], %6 {strides = array<i32>} : memref<4x128xf32, #tpu.memory_space<vmem>>, vector<4x128xf32>,
    return
  }
  func.func @transform_0(%arg0: i32) -> (i32, i32) {
    %c0_i32 = arith.constant 0 : i32
    %c0_i32_0 = arith.constant 0 : i32
    %c0_i32_1 = arith.constant 0 : i32
    return %c0_i32, %c0_i32_0 : i32, i32
  }
  func.func @transform_1(%arg0: i32) -> (i32, i32) {
    %c0_i32 = arith.constant 0 : i32
    %c0_i32_0 = arith.constant 0 : i32
    %c0_i32_1 = arith.constant 0 : i32
    return %c0_i32, %c0_i32_0 : i32, i32
  }
  func.func @transform_2(%arg0: i32) -> (i32, i32) {
    %c0_i32 = arith.constant 0 : i32
    %c0_i32_0 = arith.constant 0 : i32
    return %c0_i32, %arg0 : i32, i32
  }
  func.func @transform_3(%arg0: i32) -> (i32, i32) {
    %c0_i32 = arith.constant 0 : i32
    %c0_i32_0 = arith.constant 0 : i32
    return %c0_i32, %arg0 : i32, i32
  }
  func.func @transform_4(%arg0: i32) -> (i32, i32) {
    %c0_i32 = arith.constant 0 : i32
    %c0_i32_0 = arith.constant 0 : i32
    return %c0_i32, %arg0 : i32, i32
  }
  func.func @transform_5(%arg0: i32) -> (i32, i32) {
    %c0_i32 = arith.constant 0 : i32
    %c0_i32_0 = arith.constant 0 : i32
    return %c0_i32, %arg0 : i32, i32
  }
}

</mosaic_0001>

<bundles_post_ra>
// kernel: cgh_forward.5
= control target key start
LH: loop header
LB: loop body
LE: loop exit
PB: predicated region body
PF: predicated region fallthrough
CT: control target
= control target key end

     0   :  { %v173_v0 = vmov 0.0   ;;  %vm174_vm0 = vmmov 0   ;;  %vm29_vm1 = vcmask 130048   ;;  %vm91_vm2 = vcmask 261120   ;;  %s226_s2 = inlined_call_operand.vmem [shape: bf16[16,128], index: 2, kind: input, shape index: {}]   ;;  %s227_s3 = inlined_call_operand.vmem [shape: bf16[32,128], index: 3, kind: input, shape index: {}]   ;;  %s228_s0 = inlined_call_operand.vmem [shape: bf16[4,16], index: 0, kind: input, shape index: {}]   ;;  %s229_s1 = inlined_call_operand.vmem [shape: bf16[4,32], index: 1, kind: input, shape index: {}]   ;;  %s230_s4 = inlined_call_operand.vmem [shape: f32[4,128], index: 4, kind: output, shape index: {0}]   ;;  %s231_s5 = inlined_call_operand.vmem [shape: f32[4,128], index: 5, kind: output, shape index: {1}]  }
   0x1   :  { %154 = vmatprep.subr.bf16.mxu0 %v173_v0  ;;  %160 = vmatprep.subr.bf16.mxu1 %v173_v0  ;;  %v170_v1 = vld [vmem:[%s226_s2] sm:$0xff]   ;;  %v171_v2 = vld [vmem:[%s227_s3 + $0x8] sm:$0xff]  }
   0x2   :  { %156 = vmatprep.mubr.msk.bf16.mxu0 %vm174_vm0, %v173_v0  ;;  %164 = vmatprep.mubr.msk.bf16.mxu1 %vm174_vm0, %v173_v0  ;;  %v20_v3 = vld [vmem:[%s228_s0] sm:$0x3] }
   0x3   :  { %155 = vmatpush3.bf16.msra.mxu0 %v170_v1  ;;  %161 = vmatpush3.bf16.msra.mxu1 %v171_v2  ;;  %v172_v4 = vld [vmem:[%s227_s3] sm:$0xff]  }
   0x4   :  { %162 = vmatprep.subr.bf16.mxu1 %v173_v0  ;;  %v74_v5 = vld [vmem:[%s229_s1] sm:$0x3] }
   0x6   :  { %157 = vmatmul.mubr.msk.bf16.vlgmr.msra.gmra.mxu0 %vm29_vm1, %v20_v3 }
   0x7   :  { %163 = vmatpush3.bf16.msra.mxu1 %v172_v4 }
   0xa   :  { %165 = vmatmul.mubr.msk.bf16.vlgmr.msra.gmra.mxu1 %vm91_vm2, %v74_v5 }
  0xc6   :  { %v67_v6 = vpop.f32.mrf.mxu0 }
  0xc7   :  { %73 = vst [vmem:[%s230_s4] sm:$0xf] %v67_v6 }
  0xc8   :  { %v158_v7 = vpop.f32.mrf.mxu0 }
  0xca   :  { %v70_v8 = vpop.f32.mrf.mxu0  ;;  %v129_v9 = vpop.f32.mrf.mxu1 }
  0xcb   :  { %135 = vst [vmem:[%s231_s5] sm:$0xf] %v129_v9 }
  0xcc   :  { %v159_v10 = vpop.f32.mrf.mxu0  ;;  %v166_v11 = vpop.f32.mrf.mxu1 }
  0xce   :  { %v132_v12 = vpop.f32.mrf.mxu1 }
  0xd0   :  { %v167_v13 = vpop.f32.mrf.mxu1 }

// kernel: cgh_forward.3
= control target key start
LH: loop header
LB: loop body
LE: loop exit
PB: predicated region body
PF: predicated region fallthrough
CT: control target
= control target key end

     0   :  { %s1646_s21 = smov 0   ;;  %s1826_s0 = inlined_call_operand.vmem [shape: f32[2,2,16,3], index: 0, kind: input, shape index: {}]   ;;  %s1827_s1 = inlined_call_operand.vmem [shape: f32[2,2,4,3], index: 1, kind: input, shape index: {}]   ;;  %s1828_s2 = inlined_call_operand.vmem [shape: f32[2,3,128], index: 2, kind: input, shape index: {}]   ;;  %s1829_s3 = inlined_call_operand.vmem [shape: f32[2,3,128], index: 3, kind: input, shape index: {}]   ;;  %s1830_s4 = inlined_call_operand.vmem [shape: bf16[2,128,128], index: 4, kind: input, shape index: {}]   ;;  %s1831_s5 = inlined_call_operand.vmem [shape: f32[2,1,128], index: 5, kind: input, shape index: {}]   ;;  %s1832_s6 = inlined_call_operand.vmem [shape: bf16[2,128,128], index: 6, kind: input, shape index: {}]   ;;  %s1833_s7 = inlined_call_operand.vmem [shape: f32[2,1,128], index: 7, kind: input, shape index: {}]   ;;  %s1834_s8 = inlined_call_operand.vmem [shape: bf16[2,128,16], index: 8, kind: input, shape index: {}]   ;;  %s1835_s9 = inlined_call_operand.vmem [shape: f32[2,1,16], index: 9, kind: input, shape index: {}]   ;;  %s1836_s10 = inlined_call_operand.vmem [shape: f32[2,2,16], index: 10, kind: output, shape index: {0}]   ;;  %s1837_s11 = inlined_call_operand.vmem [shape: bf16[2,2,16,128], index: 11, kind: output, shape index: {1}]   ;;  %s1838_s12 = inlined_call_operand.vmem [shape: bf16[2,2,4,128], index: 12, kind: output, shape index: {2}]  }
   0x1 LB: > { %s1356_s22 = sadd.s32 4294967295, %s1574_s21   ;;  %p1360_p0 = scmp.ge.s32.totalorder %s1574_s21, 1  ;;  %s1574_s21 = sphi %s1646_s21, %s23_s21  }
   0x2   : > { %p449_p1 = scmp.lt.s32.totalorder %s1574_s21, 3 }
   0x4   : > { %p450_p2 = pnand %p1360_p0, %p449_p1 }
   0x5   : > { %p537_p3 = scmp.lt.s32.totalorder (!%p450_p2), %s1356_s22, 1 }
   0x6   : > { %453 = sbr.rel (%p450_p2) target bundleno = 929 (0x3a1), region = 60 }
   0xb   : > { %v619_v0 = vlaneseq  ;;  %v1576_v1 = vmov 1   ;;  %v1577_v2 = vmov 0   ;;  %s1840_s22 = smov (!%p537_p3, %s1356_s22), 1  ;;  %v1578_v11 = vmov 0.0  }
   0xc   : > { %1534 = vset.pattern.permute.xlu1 %v1576_v1  ;;  %1533 = vset.pattern.permute.xlu0 %v1577_v2  ;;  %s1412_s23 = sshll.u32 %s1840_s22, 3  ;;  %s1661_s24 = sshll.u32 %s1840_s22, 2  ;;  %v1579_v16 = vmov 2   ;;  %vm1580_vm0 = vmmov 0   ;;  %vm764_vm1 = vcmask 1043456   ;;  %vm811_vm2 = vcmask 1041409  }
   0xd   : > { %v1657_v3 = vshrl.u32 %v619_v0, 7  ;;  %s546_s27 = scalar_lea.vmem %s1827_s1, %s1412_s23  ;;  %s550_s30 = scalar_lea.vmem %s1828_s2, %s1661_s24  ;;  %1460 = vmatprep.subr.bf16.mxu0 %v1578_v11  ;;  %1480 = vmatprep.subr.bf16.mxu1 %v1578_v11  ;;  %vm1130_vm3 = vcmask 123904  }
   0xe   : > { %v687_v6 = vld [vmem:[%s546_s27] sm:$0xf]  ;;  %s1681_s13 = sshll.u32 %s1840_s22, 6  ;;  %v688_v10 = vld [vmem:[%s546_s27 + $0x4] sm:$0xf]  ;;  %1476 = vmatprep.mubr.msk.bf16.mxu0 %vm1580_vm0, %v1578_v11  ;;  %1496 = vmatprep.mubr.msk.bf16.mxu1 %vm1580_vm0, %v1578_v11  ;;  %s554_s28 = scalar_lea.vmem %s1829_s3, %s1661_s24 }
   0xf   : > { %v645_v4 = vsub.s32 1, %v1657_v3  ;;  %v621_v5 = vsub.s32 0, %v1657_v3  ;;  %v598_v7 = vld [vmem:[%s550_s30] sm:$0x7]  ;;  %707 = vperm.xlu1 %1534, %v687_v6   ;;  %692 = vperm.xlu0 %1533, %v687_v6   ;;  %s1688_s16 = scalar_lea.vmem %s1830_s4, %s1681_s13  ;;  %v673_v12 = vsub.s32 2, %v1657_v3  ;;  %s1703_s19 = scalar_lea.vmem %s1834_s8, %s1681_s13 }
  0x10   : > { %v1542_v13 = vld [vmem:[%s1688_s16 + $0x38] sm:$0xff]   ;;  %v1543_v15 = vld [vmem:[%s1688_s16 + $0x30] sm:$0xff]   ;;  %v1544_v17 = vld [vmem:[%s1688_s16 + $0x28] sm:$0xff]   ;;  %s1728_s25 = scalar_lea.vmem %s1832_s6, %s1681_s13  ;;  %s592_s13 = scalar_lea.vmem %s1838_s12, %s1661_s24 }
  0x11   : > { %v1674_v8 = vrot.slane %v598_v7, %v645_v4  ;;  %v1678_v9 = vrot.slane %v598_v7, %v621_v5  ;;  %v1695_v14 = vrot.slane %v598_v7, %v673_v12  ;;  %1461 = vmatpush3.bf16.msra.mxu0 %v1542_v13  ;;  %v1545_v18 = vld [vmem:[%s1688_s16 + $0x20] sm:$0xff]   ;;  %v1546_v19 = vld [vmem:[%s1688_s16 + $0x18] sm:$0xff]   ;;  %v1547_v20 = vld [vmem:[%s1688_s16 + $0x10] sm:$0xff]   ;;  %s562_s15 = scalar_lea.vmem %s1831_s5, %s1840_s22  ;;  %s1416_s26 = sshll.u32 %s1840_s22, 4 }
  0x12   : > { %1462 = vmatprep.subr.bf16.mxu0 %v1578_v11  ;;  %v1548_v21 = vld [vmem:[%s1688_s16 + $0x8] sm:$0xff]   ;;  %v1549_v22 = vld [vmem:[%s1688_s16] sm:$0xff]   ;;  %v1550_v23 = vld [vmem:[%s1728_s25 + $0x38] sm:$0xff]   ;;  %s1411_s16 = sshll.u32 %s1840_s22, 5  ;;  %s587_s29 = scalar_lea.vmem %s1837_s11, %s1416_s26 }
  0x13   : > { %711 = vperm.xlu1 %1534, %v688_v10   ;;  %697 = vperm.xlu0 %1533, %v688_v10   ;;  %v1551_v24 = vld [vmem:[%s1728_s25 + $0x30] sm:$0xff]   ;;  %v1552_v25 = vld [vmem:[%s1728_s25 + $0x28] sm:$0xff]   ;;  %v1553_v26 = vld [vmem:[%s1728_s25 + $0x20] sm:$0xff]   ;;  %s541_s20 = scalar_lea.vmem %s1826_s0, %s1411_s16  ;;  %s578_s24 = scalar_lea.vmem %s1835_s9, %s1840_s22 }
  0x14   : > { %1481 = vmatpush3.bf16.msra.mxu1 %v1550_v23  ;;  %v1554_v27 = vld [vmem:[%s1728_s25 + $0x18] sm:$0xff]   ;;  %v1555_v28 = vld [vmem:[%s1728_s25 + $0x10] sm:$0xff]   ;;  %v689_v29 = vld [vmem:[%s554_s28] sm:$0x7]  ;;  %s1373_s14 = sshll.u32 %s1840_s22, 1 }
  0x15   : > { %1463 = vmatpush3.bf16.msra.mxu0 %v1543_v15  ;;  %1482 = vmatprep.subr.bf16.mxu1 %v1578_v11  ;;  %v717_v32 = vrot.slane %v689_v29, %v645_v4  ;;  %v703_v33 = vrot.slane %v689_v29, %v621_v5  ;;  %v733_v36 = vrot.slane %v689_v29, %v673_v12  ;;  %v1562_v23 = vld [vmem:[%s1703_s19 + $0x18] sm:$0xff]   ;;  %s582_s17 = scalar_lea.vmem %s1836_s10, %s1373_s14 }
  0x16   : > { %1464 = vmatprep.subr.bf16.mxu0 %v1578_v11 }
  0x17   : > { %1536 = vset.pattern.permute.xlu1 %v1579_v16  ;;  %1535 = vset.pattern.permute.xlu0 %v1579_v16 }
  0x18   : > { %727 = vperm.xlu1 %1536, %v688_v10   ;;  %723 = vperm.xlu0 %1535, %v687_v6  }
  0x19   : > { %1465 = vmatpush3.bf16.msra.mxu0 %v1544_v17  ;;  %1483 = vmatpush3.bf16.msra.mxu1 %v1551_v24  ;;  %v1556_v17 = vld [vmem:[%s1728_s25 + $0x8] sm:$0xff]   ;;  %v1563_v24 = vld [vmem:[%s1703_s19 + $0x10] sm:$0xff]  }
  0x1a   : > { %1466 = vmatprep.subr.bf16.mxu0 %v1578_v11  ;;  %1484 = vmatprep.subr.bf16.mxu1 %v1578_v11 }
  0x1c   : > { %1537 = vset.pattern.permute.xlu0 %v1577_v2  ;;  %1539 = vset.pattern.permute.xlu1 %v1576_v1 }
  0x1d   : > { %1467 = vmatpush3.bf16.msra.mxu0 %v1545_v18  ;;  %1485 = vmatpush3.bf16.msra.mxu1 %v1552_v25  ;;  %v1557_v18 = vld [vmem:[%s1728_s25] sm:$0xff]   ;;  %s570_s25 = scalar_lea.vmem %s1833_s7, %s1840_s22 }
  0x1e   : > { %1468 = vmatprep.subr.bf16.mxu0 %v1578_v11  ;;  %1486 = vmatprep.subr.bf16.mxu1 %v1578_v11  ;;  %v1382_v25 = vld [vmem:[%s562_s15] ss:$0 sm:$0xff] }
  0x21   : > { %1469 = vmatpush3.bf16.msra.mxu0 %v1546_v19  ;;  %1487 = vmatpush3.bf16.msra.mxu1 %v1553_v26  ;;  %v1558_v19 = vld [vmem:[%s1703_s19 + $0x38] sm:$0xff]  }
  0x22   : > { %1470 = vmatprep.subr.bf16.mxu0 %v1578_v11  ;;  %1488 = vmatprep.subr.bf16.mxu1 %v1578_v11 }
  0x25   : > { %1471 = vmatpush3.bf16.msra.mxu0 %v1547_v20  ;;  %1489 = vmatpush3.bf16.msra.mxu1 %v1554_v27  ;;  %v1559_v20 = vld [vmem:[%s1703_s19 + $0x30] sm:$0xff]  }
  0x26   : > { %1472 = vmatprep.subr.bf16.mxu0 %v1578_v11  ;;  %1490 = vmatprep.subr.bf16.mxu1 %v1578_v11 }
  0x29   : > { %1473 = vmatpush3.bf16.msra.mxu0 %v1548_v21  ;;  %1491 = vmatpush3.bf16.msra.mxu1 %v1555_v28  ;;  %v1560_v21 = vld [vmem:[%s1703_s19 + $0x28] sm:$0xff]  }
  0x2a   : > { %1474 = vmatprep.subr.bf16.mxu0 %v1578_v11  ;;  %1492 = vmatprep.subr.bf16.mxu1 %v1578_v11 }
  0x2d   : > { %1475 = vmatpush3.bf16.msra.mxu0 %v1549_v22  ;;  %1493 = vmatpush3.bf16.msra.mxu1 %v1556_v17  ;;  %v1561_v22 = vld [vmem:[%s1703_s19 + $0x20] sm:$0xff]  }
  0x2e   : > { %1500 = vmatprep.subr.bf16.mxu0 %v1578_v11  ;;  %1494 = vmatprep.subr.bf16.mxu1 %v1578_v11 }
  0x31   : > { %1495 = vmatpush3.bf16.msra.mxu1 %v1557_v18 }
  0x8a   : > { %v708_v30 = vpop.permute.xlu1 %707  ;;  %v693_v31 = vpop.permute.xlu0 %692 }
  0x8b   : > { %v718_v37 = vmul.f32 %v717_v32, %v708_v30  ;;  %v704_v38 = vmul.f32 %v703_v33, %v693_v31 }
  0x8d   : > { %v720_v43 = vadd.f32 %v718_v37, %v704_v38  ;;  %v595_v37 = vld [vmem:[%s541_s20 + $0x8] sm:$0xff]  ;;  %v596_v38 = vld [vmem:[%s541_s20 + $0x10] sm:$0xff] }
  0x8e   : > { %v712_v34 = vpop.permute.xlu1 %711  ;;  %v698_v35 = vpop.permute.xlu0 %697 }
  0x8f   : > { %v719_v39 = vmul.f32 %v717_v32, %v712_v34  ;;  %v705_v40 = vmul.f32 %v703_v33, %v698_v35  ;;  %v1564_v33 = vld [vmem:[%s1703_s19 + $0x8] sm:$0xff]   ;;  %v1565_v34 = vld [vmem:[%s1703_s19] sm:$0xff]  }
  0x90   : > { %v594_v35 = vld [vmem:[%s541_s20] sm:$0xff] }
  0x91   : > { %v721_v44 = vadd.f32 %v719_v39, %v705_v40  ;;  %601 = vperm.xlu0 %1537, %v594_v35  }
  0x93   : > { %v728_v41 = vpop.permute.xlu1 %727  ;;  %v724_v42 = vpop.permute.xlu0 %723 }
  0x94   : > { %v735_v45 = vmul.f32 %v733_v36, %v728_v41  ;;  %v734_v46 = vmul.f32 %v733_v36, %v724_v42  ;;  %v1785_v36 = vld [vmem:[%s541_s20 + $0x18] sm:$0xff] }
  0x95   : > { %640 = vperm.xlu1 %1539, %v1785_v36   ;;  %606 = vperm.xlu0 %1537, %v595_v37  }
  0x96   : > { %v737_v47 = vadd.f32 %v735_v45, %v721_v44  ;;  %v736_v48 = vadd.f32 %v734_v46, %v720_v43 }
  0x98   : > { %v739_v49 = vmax.f32 %v737_v47, 0.0  ;;  %v738_v50 = vmax.f32 %v736_v48, 0.0 }
  0x99   : > { %1541 = vset.pattern.permute.xlu1 %v1579_v16  ;;  %611 = vperm.xlu0 %1537, %v596_v38  }
  0x9a   : > { %v761_v51 = vpack.c.bf16 %v739_v49, %v739_v49  ;;  %v772_v52 = vsel %vm764_vm1, %v739_v49, 0.0  ;;  %v760_v53 = vpack.c.bf16 %v738_v50, %v738_v50  ;;  %v765_v54 = vsel %vm764_vm1, %v738_v50, 0.0 }
  0x9b   : > { %v773_v55 = vrot.slane %v772_v52, 4  ;;  %v766_v56 = vrot.slane %v765_v54, 4 }
  0x9c   : > { %763 = vst [vmem:[%s592_s13 + $0x2] sm:$0x3] %v761_v51  ;;  %762 = vst [vmem:[%s592_s13] sm:$0x3] %v760_v53 }
  0x9d   : > { %v774_v57 = vadd.f32 %v773_v55, %v772_v52  ;;  %v767_v58 = vadd.f32 %v766_v56, %v765_v54  ;;  %616 = vperm.xlu0 %1537, %v1785_v36  }
  0x9f   : > { %v775_v59 = vrot.slane %v774_v57, 2  ;;  %v768_v60 = vrot.slane %v767_v58, 2 }
  0xa1   : > { %v776_v61 = vadd.f32 %v775_v59, %v774_v57  ;;  %v769_v62 = vadd.f32 %v768_v60, %v767_v58  ;;  %1538 = vset.pattern.permute.xlu0 %v1576_v1 }
  0xa2   : > { %628 = vperm.xlu0 %1538, %v594_v35  }
  0xa3   : > { %v777_v63 = vrot.slane %v776_v61, 1  ;;  %v770_v0 = vrot.slane %v769_v62, 1 }
  0xa5   : > { %v778_v2 = vadd.f32 %v777_v63, %v776_v61  ;;  %v771_v3 = vadd.f32 %v770_v0, %v769_v62 }
  0xa6   : > { %632 = vperm.xlu0 %1538, %v595_v37  }
  0xa7   : > { %v780_v4 = vmul.f32 0.25, %v771_v3  ;;  %v781_v5 = vmul.f32 0.25, %v778_v2 }
  0xa9   : > { %v782_v6 = vpack.c.bf16 %v780_v4, %v780_v4  ;;  %v783_v7 = vpack.c.bf16 %v781_v5, %v781_v5 }
  0xaa   : > { %636 = vperm.xlu0 %1538, %v596_v38  }
  0xab   : > { %v809_v10 = vunpack.c.l.b16 %v782_v6  ;;  %v810_v12 = vunpack.c.l.b16 %v783_v7 }
  0xad   : > { %v812_v13 = vsel %vm811_vm2, %v810_v12, %v809_v10 }
  0xae   : > { %v813_v15 = vpack.c.b16 %v812_v13, %v812_v13  ;;  %1540 = vset.pattern.permute.xlu0 %v1579_v16 }
  0xaf   : > { %656 = vperm.xlu0 %1540, %v594_v35  }
  0xb0   : > { %1477 = vmatmul.mubr.bf16.vlgmr.msra.gmra.mxu0 %v813_v15 }
  0xb1   : > { %1516 = vmatprep.mubr.msk.bf16.mxu0 %vm1580_vm0, %v1578_v11  ;;  %1501 = vmatpush3.bf16.msra.mxu0 %v1558_v19 }
  0xb2   : > { %1502 = vmatprep.subr.bf16.mxu0 %v1578_v11 }
  0xb3   : > { %660 = vperm.xlu0 %1540, %v595_v37  }
  0xb5   : > { %1503 = vmatpush3.bf16.msra.mxu0 %v1559_v20 }
  0xb6   : > { %1504 = vmatprep.subr.bf16.mxu0 %v1578_v11 }
  0xb7   : > { %664 = vperm.xlu0 %1540, %v596_v38  }
  0xb9   : > { %1505 = vmatpush3.bf16.msra.mxu0 %v1560_v21 }
  0xba   : > { %1506 = vmatprep.subr.bf16.mxu0 %v1578_v11 }
  0xbd   : > { %1507 = vmatpush3.bf16.msra.mxu0 %v1561_v22 }
  0xbe   : > { %1508 = vmatprep.subr.bf16.mxu0 %v1578_v11 }
  0xc1   : > { %1509 = vmatpush3.bf16.msra.mxu0 %v1562_v23 }
  0xc2   : > { %1510 = vmatprep.subr.bf16.mxu0 %v1578_v11 }
  0xc5   : > { %1511 = vmatpush3.bf16.msra.mxu0 %v1563_v24 }
  0xc6   : > { %1512 = vmatprep.subr.bf16.mxu0 %v1578_v11 }
  0xc9   : > { %1513 = vmatpush3.bf16.msra.mxu0 %v1564_v33 }
  0xca   : > { %1514 = vmatprep.subr.bf16.mxu0 %v1578_v11  ;;  %v1391_v11 = vld [vmem:[%s570_s25] ss:$0 sm:$0xff] }
  0xcd   : > { %1515 = vmatpush3.bf16.msra.mxu0 %v1565_v34 }
 0x10c   : > { %v602_v45 = vpop.permute.xlu0 %601 }
 0x10d   : > { %v623_v52 = vmul.f32 %v1678_v9, %v602_v45 }
 0x110   : > { %v607_v46 = vpop.permute.xlu0 %606  ;;  %v641_v16 = vpop.permute.xlu1 %640 }
 0x111   : > { %v650_v49 = vmul.f32 %v1674_v8, %v641_v16  ;;  %v624_v56 = vmul.f32 %v1678_v9, %v607_v46 }
 0x114   : > { %v612_v47 = vpop.permute.xlu0 %611 }
 0x115   : > { %v625_v48 = vmul.f32 %v1678_v9, %v612_v47 }
 0x118   : > { %v617_v50 = vpop.permute.xlu0 %616 }
 0x119   : > { %v626_v51 = vmul.f32 %v1678_v9, %v617_v50 }
 0x11b   : > { %v654_v53 = vadd.f32 %v650_v49, %v626_v51 }
 0x11d   : > { %v629_v54 = vpop.permute.xlu0 %628 }
 0x11e   : > { %v647_v55 = vmul.f32 %v1674_v8, %v629_v54 }
 0x120   : > { %v651_v57 = vadd.f32 %v647_v55, %v623_v52 }
 0x121   : > { %v633_v58 = vpop.permute.xlu0 %632 }
 0x122   : > { %v648_v59 = vmul.f32 %v1674_v8, %v633_v58 }
 0x124   : > { %v652_v60 = vadd.f32 %v648_v59, %v624_v56 }
 0x125   : > { %v637_v61 = vpop.permute.xlu0 %636 }
 0x126   : > { %v649_v62 = vmul.f32 %v1674_v8, %v637_v61  ;;  %v1400_v8 = vld [vmem:[%s578_s24] ss:$0 sm:$0xff] }
 0x128   : > { %v653_v63 = vadd.f32 %v649_v62, %v625_v48 }
 0x12a   : > { %v657_v0 = vpop.permute.xlu0 %656 }
 0x12b   : > { %v675_v2 = vmul.f32 %v1695_v14, %v657_v0 }
 0x12d   : > { %v679_v3 = vadd.f32 %v675_v2, %v651_v57 }
 0x12e   : > { %v661_v4 = vpop.permute.xlu0 %660 }
 0x12f   : > { %v676_v5 = vmul.f32 %v1695_v14, %v661_v4  ;;  %v683_v6 = vmax.f32 %v679_v3, 0.0 }
 0x131   : > { %v680_v9 = vadd.f32 %v676_v5, %v652_v60 }
 0x132   : > { %v665_v21 = vpop.permute.xlu0 %664 }
 0x133   : > { %v684_v7 = vmax.f32 %v680_v9, 0.0  ;;  %v677_v23 = vmul.f32 %v1695_v14, %v665_v21 }
 0x135   : > { %v1425_v10 = vpack.c.bf16 %v684_v7, %v683_v6 }
 0x137   : > { %1426 = vst [vmem:[%s587_s29] sm:$0xff] %v1425_v10  }
 0x170   : > { %v897_v26 = vpop.f32.mrf.mxu0 }
 0x171   : > { %v898_v27 = vadd.f32 %v1382_v25, %v897_v26  ;;  %v681_v26 = vadd.f32 %v677_v23, %v653_v63 }
 0x172   : > { %v1478_v28 = vpop.f32.mrf.mxu0 }
 0x173   : > { %v903_v29 = vmax.f32 %v898_v27, 0.0 }
 0x174   : > { %v900_v30 = vpop.f32.mrf.mxu0 }
 0x175   : > { %v904_v31 = vpack.c.bf16 %v903_v29, %v903_v29  ;;  %v685_v29 = vmax.f32 %v681_v26, 0.0 }
 0x176   : > { %v1479_v32 = vpop.f32.mrf.mxu0 }
 0x177   : > { %1497 = vmatmul.mubr.bf16.vlgmr.msra.gmra.mxu1 %v904_v31 }
 0x237   : > { %v1010_v39 = vpop.f32.mrf.mxu1 }
 0x238   : > { %v1011_v40 = vadd.f32 %v1391_v11, %v1010_v39 }
 0x239   : > { %v1498_v41 = vpop.f32.mrf.mxu1 }
 0x23a   : > { %v1016_v42 = vmax.f32 %v1011_v40, 0.0 }
 0x23b   : > { %v1013_v43 = vpop.f32.mrf.mxu1 }
 0x23c   : > { %v1017_v44 = vpack.c.bf16 %v1016_v42, %v1016_v42 }
 0x23d   : > { %v1499_v1 = vpop.f32.mrf.mxu1 }
 0x23e   : > { %1517 = vmatmul.mubr.bf16.vlgmr.msra.gmra.mxu0 %v1017_v44 }
 0x2fe   : > { %v1123_v12 = vpop.f32.mrf.mxu0 }
 0x2ff   : > { %v1124_v13 = vadd.f32 %v1400_v8, %v1123_v12 }
 0x300   : > { %v1518_v15 = vpop.f32.mrf.mxu0 }
 0x301   : > { %v1129_v17 = vmul.f32 %v1124_v13, %v1124_v13 }
 0x302   : > { %v1126_v18 = vpop.f32.mrf.mxu0 }
 0x303   : > { %v1131_v19 = vsel %vm1130_vm3, %v1129_v17, 0.0 }
 0x304   : > { %v1519_v20 = vpop.f32.mrf.mxu0  ;;  %1132 = vadd.xlane.f32.xlu1 %v1131_v19 }
 0x315   : > { %668 = vperm.xlu1 %1541, %v1785_v36  }
 0x38d   : > { %v1133_v22 = vpop.xlane.xlu1 %1132 }
 0x38e   : > { %v1134_v24 = vmax.f32 %v1133_v22, 1e-24 }
 0x390   : > { %1566 = vrsqrt.f32 %v1134_v24 }
 0x391   : > { %v669_v25 = vpop.permute.xlu1 %668 }
 0x392   : > { %v678_v27 = vmul.f32 %v1695_v14, %v669_v25 }
 0x394   : > { %v682_v28 = vadd.f32 %v678_v27, %v654_v53 }
 0x396   : > { %v686_v30 = vmax.f32 %v682_v28, 0.0 }
 0x398   : > { %v1430_v31 = vpack.c.bf16 %v686_v30, %v685_v29 }
 0x39a   : > { %1432 = vst [vmem:[%s587_s29 + $0x8] sm:$0xff] %v1430_v31  }
 0x39d   : > { %v1567_v32 = vpop.eup %1566 }
 0x39e   : > { %v1136_v33 = vmul.f32 %v1567_v32, %v1124_v13 }
 0x3a0   : > { %1137 = vst.msk [vmem:[%s582_s17] sm:$0x3] %vm1130_vm3, %v1136_v33 }
 0x3a1 PF: > { %s23_s21 = sadd.s32 1, %s1574_s21  }
 0x3a2   : > { %p20_p4 = scmp.ge.s32.totalorder %s23_s21, 4  }
 0x3a4   :  { %22 = sbr.rel (!%p20_p4) target bundleno = 1 (0x1), region = 141 }

// kernel: cgh_forward.4
= control target key start
LH: loop header
LB: loop body
LE: loop exit
PB: predicated region body
PF: predicated region fallthrough
CT: control target
= control target key end

     0   :  { %s1692_s17 = smov 0   ;;  %s1846_s0 = inlined_call_operand.vmem [shape: bf16[2,2,16,128], index: 0, kind: input, shape index: {}]   ;;  %s1847_s1 = inlined_call_operand.vmem [shape: bf16[2,2,4,128], index: 1, kind: input, shape index: {}]   ;;  %s1848_s2 = inlined_call_operand.vmem [shape: f32[2,4,16], index: 2, kind: input, shape index: {}]   ;;  %s1849_s3 = inlined_call_operand.vmem [shape: bf16[2,128,128], index: 3, kind: input, shape index: {}]   ;;  %s1850_s4 = inlined_call_operand.vmem [shape: bf16[2,128,128], index: 4, kind: input, shape index: {}]   ;;  %s1851_s5 = inlined_call_operand.vmem [shape: f32[2,1,128], index: 5, kind: input, shape index: {}]   ;;  %s1852_s6 = inlined_call_operand.vmem [shape: f32[2,1,128], index: 6, kind: input, shape index: {}]   ;;  %s1853_s7 = inlined_call_operand.vmem [shape: bf16[2,128,128], index: 7, kind: input, shape index: {}]   ;;  %s1854_s8 = inlined_call_operand.vmem [shape: f32[2,1,128], index: 8, kind: input, shape index: {}]   ;;  %s1855_s9 = inlined_call_operand.vmem [shape: bf16[2,128,32], index: 9, kind: input, shape index: {}]   ;;  %s1856_s10 = inlined_call_operand.vmem [shape: f32[2,1,32], index: 10, kind: input, shape index: {}]   ;;  %s1857_s11 = inlined_call_operand.vmem [shape: f32[2,2,32], index: 11, kind: output, shape index: {}]  }
   0x1 LB: > { %s1366_s18 = sadd.s32 4294967295, %s1627_s17   ;;  %p1370_p0 = scmp.ge.s32.totalorder %s1627_s17, 1  ;;  %s1627_s17 = sphi %s1692_s17, %s21_s17  }
   0x2   : > { %p419_p1 = scmp.lt.s32.totalorder %s1627_s17, 3 }
   0x4   : > { %p420_p2 = pnand %p1370_p0, %p419_p1 }
   0x5   : > { %p495_p3 = scmp.lt.s32.totalorder (!%p420_p2), %s1366_s18, 1 }
   0x6   : > { %423 = sbr.rel (%p420_p2) target bundleno = 996 (0x3e4), region = 64 }
   0xb   : > { %v1629_v0 = vmov 0.0   ;;  %s1859_s18 = smov (!%p495_p3, %s1366_s18), 1  ;;  %vm1630_vm0 = vmmov 0   ;;  %v542_v7 = vld [vmem:[%s1848_s2] sm:$0xf]  ;;  %vm552_vm1 = vcmask 130048   ;;  %v741_v23 = vlaneseq }
   0xc   : > { %1482 = vmatprep.subr.mxu0 %v1629_v0  ;;  %1489 = vmatprep.subr.mxu1 %v1629_v0  ;;  %s1425_s19 = sshll.u32 %s1859_s18, 4  ;;  %s1710_s20 = sshll.u32 %s1859_s18, 6  ;;  %v543_v8 = vld [vmem:[%s1848_s2 + $0x4] sm:$0xf]  ;;  %v1631_v21 = vmov 1983009808  }
   0xd   : > { %1486 = vmatprep.mubr.msk.f32.mxu0 %vm1630_vm0, %v1629_v0  ;;  %1493 = vmatprep.mubr.msk.f32.mxu1 %vm1630_vm0, %v1629_v0  ;;  %s499_s23 = scalar_lea.vmem %s1846_s0, %s1425_s19  ;;  %s1719_s26 = scalar_lea.vmem %s1849_s3, %s1710_s20  ;;  %v739_v22 = vunpack.c.l.s4 %v1631_v21  ;;  %v742_v26 = vshrl.u32 %v741_v23, 7  ;;  %vm956_vm2 = vcmask 1043456   ;;  %vm1003_vm3 = vcmask 1041409  }
   0xe   : > { %s1725_s29 = scalar_lea.vmem %s1850_s4, %s1710_s20  ;;  %v1432_v1 = vld [vmem:[%s499_s23] sm:$0xff]   ;;  %v1439_v2 = vld [vmem:[%s499_s23 + $0x8] sm:$0xff]   ;;  %v1589_v10 = vld [vmem:[%s1719_s26 + $0x38] sm:$0xff]   ;;  %s1756_s19 = scalar_lea.vmem %s1853_s7, %s1710_s20  ;;  %vm1209_vm4 = vcmask 254976  }
   0xf   : > { %v1433_v3 = vunpack.c.l.bf16 %v1432_v1  ;;  %v1434_v4 = vunpack.c.h.bf16 %v1432_v1  ;;  %v1437_v5 = vunpack.c.l.bf16 %v1439_v2  ;;  %v1438_v6 = vunpack.c.h.bf16 %v1439_v2  ;;  %v1587_v9 = vld [vmem:[%s1725_s29 + $0x38] sm:$0xff]   ;;  %v1588_v11 = vld [vmem:[%s1725_s29 + $0x30] sm:$0xff]   ;;  %v1590_v13 = vld [vmem:[%s1725_s29 + $0x28] sm:$0xff]   ;;  %s1426_s21 = sshll.u32 %s1859_s18, 2  ;;  %s1768_s24 = scalar_lea.vmem %s1855_s9, %s1710_s20 }
  0x10   : > { %v1591_v12 = vld [vmem:[%s1719_s26 + $0x30] sm:$0xff]   ;;  %v1593_v14 = vld [vmem:[%s1719_s26 + $0x28] sm:$0xff]   ;;  %v1592_v15 = vld [vmem:[%s1725_s29 + $0x20] sm:$0xff]   ;;  %s504_s27 = scalar_lea.vmem %s1847_s1, %s1426_s21  ;;  %v740_v25 = vunpack.c.0.s8 %v739_v22  ;;  %s520_s13 = scalar_lea.vmem %s1852_s6, %s1859_s18 }
  0x11   : > { %1483 = vmatpush3.msra.mxu0 %v1434_v4  ;;  %1490 = vmatpush3.msra.mxu1 %v1438_v6  ;;  %v1595_v16 = vld [vmem:[%s1719_s26 + $0x20] sm:$0xff]   ;;  %v1594_v17 = vld [vmem:[%s1725_s29 + $0x18] sm:$0xff]   ;;  %v1596_v19 = vld [vmem:[%s1725_s29 + $0x10] sm:$0xff]   ;;  %s528_s16 = scalar_lea.vmem %s1854_s8, %s1859_s18  ;;  %s536_s22 = scalar_lea.vmem %s1856_s10, %s1859_s18 }
  0x12   : > { %1484 = vmatprep.subr.mxu0 %v1629_v0  ;;  %1491 = vmatprep.subr.mxu1 %v1629_v0  ;;  %v1597_v18 = vld [vmem:[%s1719_s26 + $0x18] sm:$0xff]   ;;  %v1599_v20 = vld [vmem:[%s1719_s26 + $0x10] sm:$0xff]   ;;  %v1598_v24 = vld [vmem:[%s1725_s29 + $0x8] sm:$0xff]   ;;  %v743_v31 = vsub.s32 %v740_v25, %v742_v26  ;;  %s1383_s23 = sshll.u32 %s1859_s18, 1 }
  0x13   : > { %1485 = vmatpush3.msra.mxu0 %v1433_v3  ;;  %1492 = vmatpush3.msra.mxu1 %v1437_v5  ;;  %v1601_v27 = vld [vmem:[%s1719_s26 + $0x8] sm:$0xff]   ;;  %v717_v28 = vld [vmem:[%s504_s27] sm:$0x3]  ;;  %v718_v29 = vld [vmem:[%s504_s27 + $0x2] sm:$0x3]  ;;  %s540_s20 = scalar_lea.vmem %s1857_s11, %s1383_s23 }
  0x14   : > { %1487 = vmatmul.mubr.msk.f32.vlgmr.msra.gmra.mxu0 %vm552_vm1, %v542_v7  ;;  %1494 = vmatmul.mubr.msk.f32.vlgmr.msra.gmra.mxu1 %vm552_vm1, %v543_v8  ;;  %v737_v30 = vcombine.low %v717_v28, %v718_v29  ;;  %v1600_v32 = vld [vmem:[%s1725_s29] sm:$0xff]   ;;  %v1603_v45 = vld [vmem:[%s1756_s19 + $0x38] sm:$0xff]   ;;  %v1604_v46 = vld [vmem:[%s1756_s19 + $0x30] sm:$0xff]   ;;  %s517_s29 = scalar_lea.vmem %s1851_s5, %s1859_s18 }
  0x15   : > { %1496 = vmatprep.subr.bf16.mxu0 %v1629_v0  ;;  %1516 = vmatprep.subr.bf16.mxu1 %v1629_v0  ;;  %v1602_v34 = vld [vmem:[%s1719_s26] sm:$0xff]   ;;  %v1605_v47 = vld [vmem:[%s1756_s19 + $0x28] sm:$0xff]   ;;  %v1607_v49 = vld [vmem:[%s1756_s19 + $0x18] sm:$0xff]  }
  0x16   : > { %1497 = vmatpush3.bf16.msra.mxu0 %v1587_v9  ;;  %1517 = vmatpush3.bf16.msra.mxu1 %v1589_v10  ;;  %v744_v33 = vrot.slane %v737_v30, %v743_v31  ;;  %v1606_v48 = vld [vmem:[%s1756_s19 + $0x20] sm:$0xff]   ;;  %v1608_v50 = vld [vmem:[%s1756_s19 + $0x10] sm:$0xff]   ;;  %v1609_v51 = vld [vmem:[%s1756_s19 + $0x8] sm:$0xff]  }
  0x17   : > { %1498 = vmatprep.subr.bf16.mxu0 %v1629_v0  ;;  %1518 = vmatprep.subr.bf16.mxu1 %v1629_v0  ;;  %v1610_v52 = vld [vmem:[%s1756_s19] sm:$0xff]   ;;  %v1611_v53 = vld [vmem:[%s1768_s24 + $0x38] sm:$0xff]   ;;  %v1612_v54 = vld [vmem:[%s1768_s24 + $0x30] sm:$0xff]  }
  0x18   : > { %1512 = vmatprep.mubr.msk.bf16.mxu0 %vm1630_vm0, %v1629_v0  ;;  %1532 = vmatprep.mubr.msk.bf16.mxu1 %vm1630_vm0, %v1629_v0  ;;  %v1613_v55 = vld [vmem:[%s1768_s24 + $0x28] sm:$0xff]   ;;  %v1614_v56 = vld [vmem:[%s1768_s24 + $0x20] sm:$0xff]   ;;  %v1615_v57 = vld [vmem:[%s1768_s24 + $0x18] sm:$0xff]  }
  0x19   : > { %v1616_v58 = vld [vmem:[%s1768_s24 + $0x10] sm:$0xff]   ;;  %v1403_v60 = vld [vmem:[%s517_s29] ss:$0 sm:$0xff] }
  0x1a   : > { %1499 = vmatpush3.bf16.msra.mxu0 %v1588_v11  ;;  %1519 = vmatpush3.bf16.msra.mxu1 %v1591_v12  ;;  %v1404_v62 = vld [vmem:[%s520_s13] ss:$0 sm:$0xff] }
  0x1b   : > { %1500 = vmatprep.subr.bf16.mxu0 %v1629_v0  ;;  %1520 = vmatprep.subr.bf16.mxu1 %v1629_v0 }
  0x1e   : > { %1501 = vmatpush3.bf16.msra.mxu0 %v1590_v13  ;;  %1521 = vmatpush3.bf16.msra.mxu1 %v1593_v14 }
  0x1f   : > { %1502 = vmatprep.subr.bf16.mxu0 %v1629_v0  ;;  %1522 = vmatprep.subr.bf16.mxu1 %v1629_v0 }
  0x22   : > { %1503 = vmatpush3.bf16.msra.mxu0 %v1592_v15  ;;  %1523 = vmatpush3.bf16.msra.mxu1 %v1595_v16 }
  0x23   : > { %1504 = vmatprep.subr.bf16.mxu0 %v1629_v0  ;;  %1524 = vmatprep.subr.bf16.mxu1 %v1629_v0 }
  0x26   : > { %1505 = vmatpush3.bf16.msra.mxu0 %v1594_v17  ;;  %1525 = vmatpush3.bf16.msra.mxu1 %v1597_v18 }
  0x27   : > { %1506 = vmatprep.subr.bf16.mxu0 %v1629_v0  ;;  %1526 = vmatprep.subr.bf16.mxu1 %v1629_v0 }
  0x2a   : > { %1507 = vmatpush3.bf16.msra.mxu0 %v1596_v19  ;;  %1527 = vmatpush3.bf16.msra.mxu1 %v1599_v20 }
  0x2b   : > { %1508 = vmatprep.subr.bf16.mxu0 %v1629_v0  ;;  %1528 = vmatprep.subr.bf16.mxu1 %v1629_v0 }
  0x2e   : > { %1509 = vmatpush3.bf16.msra.mxu0 %v1598_v24  ;;  %1529 = vmatpush3.bf16.msra.mxu1 %v1601_v27 }
  0x2f   : > { %1510 = vmatprep.subr.bf16.mxu0 %v1629_v0  ;;  %1530 = vmatprep.subr.bf16.mxu1 %v1629_v0 }
  0x32   : > { %1511 = vmatpush3.bf16.msra.mxu0 %v1600_v32  ;;  %1531 = vmatpush3.bf16.msra.mxu1 %v1602_v34  ;;  %v1617_v32 = vld [vmem:[%s1768_s24 + $0x8] sm:$0xff]   ;;  %v1405_v34 = vld [vmem:[%s528_s16] ss:$0 sm:$0xff] }
  0x33   : > { %1536 = vmatprep.subr.bf16.mxu0 %v1629_v0  ;;  %1556 = vmatprep.subr.bf16.mxu1 %v1629_v0 }
  0x35   : > { %1513 = vmatmul.mubr.bf16.vlgmr.msra.gmra.mxu0 %v744_v33  ;;  %v1618_v33 = vld [vmem:[%s1768_s24] sm:$0xff]  }
  0x36   : > { %1552 = vmatprep.mubr.msk.bf16.mxu0 %vm1630_vm0, %v1629_v0  ;;  %1537 = vmatpush3.bf16.msra.mxu0 %v1603_v45 }
  0x37   : > { %1538 = vmatprep.subr.bf16.mxu0 %v1629_v0 }
  0x3a   : > { %1539 = vmatpush3.bf16.msra.mxu0 %v1604_v46 }
  0x3b   : > { %1540 = vmatprep.subr.bf16.mxu0 %v1629_v0 }
  0x3e   : > { %1541 = vmatpush3.bf16.msra.mxu0 %v1605_v47 }
  0x3f   : > { %1542 = vmatprep.subr.bf16.mxu0 %v1629_v0 }
  0x42   : > { %1543 = vmatpush3.bf16.msra.mxu0 %v1606_v48 }
  0x43   : > { %1544 = vmatprep.subr.bf16.mxu0 %v1629_v0 }
  0x46   : > { %1545 = vmatpush3.bf16.msra.mxu0 %v1607_v49 }
  0x47   : > { %1546 = vmatprep.subr.bf16.mxu0 %v1629_v0 }
  0x4a   : > { %1547 = vmatpush3.bf16.msra.mxu0 %v1608_v50 }
  0x4b   : > { %1548 = vmatprep.subr.bf16.mxu0 %v1629_v0 }
  0x4e   : > { %1549 = vmatpush3.bf16.msra.mxu0 %v1609_v51 }
  0x4f   : > { %1550 = vmatprep.subr.bf16.mxu0 %v1629_v0 }
  0x52   : > { %1551 = vmatpush3.bf16.msra.mxu0 %v1610_v52 }
  0xd4   : > { %v622_v35 = vpop.f32.mrf.mxu0  ;;  %v695_v36 = vpop.f32.mrf.mxu1 }
  0xd5   : > { %v1394_v37 = vpack.c.bf16 %v695_v36, %v622_v35 }
  0xd6   : > { %v1488_v38 = vpop.f32.mrf.mxu0  ;;  %v1495_v39 = vpop.f32.mrf.mxu1 }
  0xd7   : > { %v843_v40 = vrot.slane %v1394_v37, %v743_v31 }
  0xd9   : > { %1533 = vmatmul.mubr.bf16.vlgmr.msra.gmra.mxu1 %v843_v40 }
  0xda   : > { %1572 = vmatprep.mubr.msk.bf16.mxu1 %vm1630_vm0, %v1629_v0  ;;  %1557 = vmatpush3.bf16.msra.mxu1 %v1611_v53 }
  0xdb   : > { %1558 = vmatprep.subr.bf16.mxu1 %v1629_v0 }
  0xde   : > { %1559 = vmatpush3.bf16.msra.mxu1 %v1612_v54 }
  0xdf   : > { %1560 = vmatprep.subr.bf16.mxu1 %v1629_v0 }
  0xe2   : > { %1561 = vmatpush3.bf16.msra.mxu1 %v1613_v55 }
  0xe3   : > { %1562 = vmatprep.subr.bf16.mxu1 %v1629_v0 }
  0xe6   : > { %1563 = vmatpush3.bf16.msra.mxu1 %v1614_v56 }
  0xe7   : > { %1564 = vmatprep.subr.bf16.mxu1 %v1629_v0 }
  0xea   : > { %1565 = vmatpush3.bf16.msra.mxu1 %v1615_v57 }
  0xeb   : > { %1566 = vmatprep.subr.bf16.mxu1 %v1629_v0 }
  0xee   : > { %1567 = vmatpush3.bf16.msra.mxu1 %v1616_v58 }
  0xef   : > { %1568 = vmatprep.subr.bf16.mxu1 %v1629_v0 }
  0xf2   : > { %1569 = vmatpush3.bf16.msra.mxu1 %v1617_v32 }
  0xf3   : > { %1570 = vmatprep.subr.bf16.mxu1 %v1629_v0  ;;  %v1414_v0 = vld [vmem:[%s536_s22] ss:$0 sm:$0xff] }
  0xf5   : > { %v828_v41 = vpop.f32.mrf.mxu0 }
  0xf6   : > { %1571 = vmatpush3.bf16.msra.mxu1 %v1618_v33 }
  0xf7   : > { %v1514_v42 = vpop.f32.mrf.mxu0 }
  0xf9   : > { %v831_v43 = vpop.f32.mrf.mxu0 }
  0xfb   : > { %v1515_v44 = vpop.f32.mrf.mxu0 }
 0x199   : > { %v927_v59 = vpop.f32.mrf.mxu1 }
 0x19a   : > { %v928_v61 = vadd.f32 %v927_v59, %v828_v41 }
 0x19b   : > { %v1534_v63 = vpop.f32.mrf.mxu1 }
 0x19c   : > { %v934_v1 = vcombine.high %v928_v61, %v928_v61  ;;  %v943_v2 = vmul.f32 %v1403_v60, %v928_v61 }
 0x19d   : > { %v930_v3 = vpop.f32.mrf.mxu1 }
 0x19e   : > { %v944_v4 = vmul.f32 %v1403_v60, %v934_v1  ;;  %v952_v5 = vadd.f32 %v1404_v62, %v943_v2 }
 0x19f   : > { %v1535_v6 = vpop.f32.mrf.mxu1 }
 0x1a0   : > { %v953_v7 = vadd.f32 %v1404_v62, %v944_v4  ;;  %v954_v8 = vmax.f32 %v952_v5, 0.0 }
 0x1a2   : > { %v955_v9 = vmax.f32 %v953_v7, 0.0  ;;  %v957_v10 = vsel %vm956_vm2, %v954_v8, 0.0 }
 0x1a3   : > { %v958_v11 = vrot.slane %v957_v10, 4 }
 0x1a4   : > { %v964_v12 = vsel %vm956_vm2, %v955_v9, 0.0 }
 0x1a5   : > { %v959_v13 = vadd.f32 %v958_v11, %v957_v10  ;;  %v965_v14 = vrot.slane %v964_v12, 4 }
 0x1a7   : > { %v960_v15 = vrot.slane %v959_v13, 2  ;;  %v966_v16 = vadd.f32 %v965_v14, %v964_v12 }
 0x1a9   : > { %v961_v17 = vadd.f32 %v960_v15, %v959_v13  ;;  %v967_v18 = vrot.slane %v966_v16, 2 }
 0x1ab   : > { %v962_v19 = vrot.slane %v961_v17, 1  ;;  %v968_v20 = vadd.f32 %v967_v18, %v966_v16 }
 0x1ad   : > { %v963_v21 = vadd.f32 %v962_v19, %v961_v17  ;;  %v969_v22 = vrot.slane %v968_v20, 1 }
 0x1af   : > { %v972_v23 = vmul.f32 0.25, %v963_v21  ;;  %v970_v24 = vadd.f32 %v969_v22, %v968_v20 }
 0x1b1   : > { %v973_v25 = vmul.f32 0.25, %v970_v24  ;;  %v974_v26 = vpack.c.bf16 %v972_v23, %v972_v23 }
 0x1b3   : > { %v975_v27 = vpack.c.bf16 %v973_v25, %v973_v25  ;;  %v1001_v28 = vunpack.c.l.b16 %v974_v26 }
 0x1b5   : > { %v1002_v29 = vunpack.c.l.b16 %v975_v27 }
 0x1b7   : > { %v1004_v30 = vsel %vm1003_vm3, %v1002_v29, %v1001_v28 }
 0x1b8   : > { %v1005_v31 = vpack.c.b16 %v1004_v30, %v1004_v30 }
 0x1ba   : > { %1553 = vmatmul.mubr.bf16.vlgmr.msra.gmra.mxu0 %v1005_v31 }
 0x27a   : > { %v1089_v35 = vpop.f32.mrf.mxu0 }
 0x27b   : > { %v1090_v36 = vadd.f32 %v1405_v34, %v1089_v35 }
 0x27c   : > { %v1554_v37 = vpop.f32.mrf.mxu0 }
 0x27d   : > { %v1095_v38 = vmax.f32 %v1090_v36, 0.0 }
 0x27e   : > { %v1092_v39 = vpop.f32.mrf.mxu0 }
 0x27f   : > { %v1096_v40 = vpack.c.bf16 %v1095_v38, %v1095_v38 }
 0x280   : > { %v1555_v41 = vpop.f32.mrf.mxu0 }
 0x281   : > { %1573 = vmatmul.mubr.bf16.vlgmr.msra.gmra.mxu1 %v1096_v40 }
 0x341   : > { %v1202_v42 = vpop.f32.mrf.mxu1 }
 0x342   : > { %v1203_v43 = vadd.f32 %v1414_v0, %v1202_v42 }
 0x343   : > { %v1574_v44 = vpop.f32.mrf.mxu1 }
 0x344   : > { %v1208_v45 = vmul.f32 %v1203_v43, %v1203_v43 }
 0x345   : > { %v1205_v46 = vpop.f32.mrf.mxu1 }
 0x346   : > { %v1210_v47 = vsel %vm1209_vm4, %v1208_v45, 0.0 }
 0x347   : > { %v1575_v48 = vpop.f32.mrf.mxu1  ;;  %1211 = vadd.xlane.f32.xlu0 %v1210_v47 }
 0x3d0   : > { %v1212_v49 = vpop.xlane.xlu0 %1211 }
 0x3d1   : > { %v1213_v50 = vmax.f32 %v1212_v49, 1e-24 }
 0x3d3   : > { %1619 = vrsqrt.f32 %v1213_v50 }
 0x3e0   : > { %v1620_v51 = vpop.eup %1619 }
 0x3e1   : > { %v1215_v52 = vmul.f32 %v1620_v51, %v1203_v43 }
 0x3e3   : > { %1216 = vst.msk [vmem:[%s540_s20] sm:$0x3] %vm1209_vm4, %v1215_v52 }
 0x3e4 PF: > { %s21_s17 = sadd.s32 1, %s1627_s17  }
 0x3e5   : > { %p18_p4 = scmp.ge.s32.totalorder %s21_s17, 4  }
 0x3e7   :  { %20 = sbr.rel (!%p18_p4) target bundleno = 1 (0x1), region = 121 }

</bundles_post_ra>
